<compile_context>
chip_gen: v6e
topology: v6e:2x2x1
jax: 0.10.0
libtpu: 0.0.40
codegen_flags: <defaults>
</compile_context>

<pallas_src>
import functools

import jax
import jax.numpy as jnp
from jax.experimental import pallas as pl
from jax.experimental.pallas import tpu as pltpu


def make_lstm_heads_kernel(num_layers, hidden_dim, seq_len, batch_tile):
    """Multi-layer LSTM recurrence + fused linear heads for one batch tile."""
    H, T, B = hidden_dim, seq_len, batch_tile
    n_upper = num_layers - 1

    def kernel(*refs):
        # ---- unpack refs -------------------------------------------------
        x_ref = refs[0]                         # (T*B, D) time-major rows of this tile
        w0_ref = refs[1]                        # (D, 4H)   W_ih^T of layer 0
        b0_ref = refs[2]                        # (1, 4H)   b_ih + b_hh of layer 0
        whh0_ref = refs[3]                      # (H, 4H)   W_hh^T of layer 0
        upper = refs[4:4 + 2 * n_upper]         # per layer>0: [W_ih^T;W_hh^T], bias
        wh_ref = refs[4 + 2 * n_upper]          # (H, NH_pad) fused heads
        bh_ref = refs[5 + 2 * n_upper]          # (1, NH_pad)
        out_ref = refs[6 + 2 * n_upper]         # (B, NH_pad)

        f32 = jnp.float32

        # ---- hoisted layer-0 input projection: ONE matmul for all timesteps,
        # bias folded in; removes T MXU pushes from the sequential chain. ----
        xproj = (jnp.dot(x_ref[...].astype(f32), w0_ref[...],
                         preferred_element_type=f32)
                 + b0_ref[...])                               # (T*B, 4H)

        # ---- hoist weight loads and bias broadcasts off the recurrent path ----
        whh0 = whh0_ref[...]
        layer_w = []
        for l in range(n_upper):
            w_cat = upper[2 * l][...]                         # (2H, 4H)
            bias_b = jnp.broadcast_to(upper[2 * l + 1][...], (B, 4 * H))
            layer_w.append((w_cat, bias_b))

        def gates_to_hc(gates, c_prev):
            # Full-vreg EUP activations, then static lane slices.
            # PyTorch gate order: i, f, g, o.
            sig = jax.nn.sigmoid(gates)
            th = jnp.tanh(gates)
            i_g = sig[:, 0 * H:1 * H]
            f_g = sig[:, 1 * H:2 * H]
            g_g = th[:, 2 * H:3 * H]
            o_g = sig[:, 3 * H:4 * H]
            c_new = f_g * c_prev + i_g * g_g
            h_new = o_g * jnp.tanh(c_new)
            return h_new, c_new

        zeros = jnp.zeros((B, H), f32)
        hs = [zeros] * num_layers
        cs = [zeros] * num_layers

        # T is small & static -> fully unrolled recurrence (straight-line code,
        # scheduler sees across steps). For large T use lax.fori_loop(unroll=k).
        for t in range(T):
            # layer 0: only the recurrent matmul is left on the critical path
            gates = (xproj[t * B:(t + 1) * B, :]
                     + jnp.dot(hs[0], whh0, preferred_element_type=f32))
            hs[0], cs[0] = gates_to_hc(gates, cs[0])
            # layers > 0: one fused [inp, h] @ [W_ih^T; W_hh^T] matmul per step
            for l in range(1, num_layers):
                w_cat, bias_b = layer_w[l - 1]
                ih = jnp.concatenate([hs[l - 1], hs[l]], axis=1)   # (B, 2H)
                gates = jnp.dot(ih, w_cat, preferred_element_type=f32) + bias_b
                hs[l], cs[l] = gates_to_hc(gates, cs[l])

        h_last = hs[num_layers - 1]             # out[:, -1, :] of the top layer

        # Dropout in eval mode is identity.
        # TODO(synk): training-mode dropout (pre-head + inter-layer) not implemented.

        # fused event/reg heads: one lane-dense (H, 128-padded) matmul
        out_ref[...] = (jnp.dot(h_last, wh_ref[...], preferred_element_type=f32)
                        + bh_ref[...]).astype(out_ref.dtype)

    return kernel


def init_params(key, input_dim, hidden_dim, num_layers, num_event_classes,
                num_reg_targets):
    """Deterministic init (PyTorch-style uniform(-1/sqrt(H), 1/sqrt(H)))."""
    params = {"lstm": [], "heads": {}}
    bound = 1.0 / jnp.sqrt(jnp.float32(hidden_dim))
    for l in range(num_layers):
        in_l = input_dim if l == 0 else hidden_dim
        key, k1, k2, k3, k4 = jax.random.split(key, 5)
        w_ih = jax.random.uniform(k1, (4 * hidden_dim, in_l), jnp.float32, -bound, bound)
        w_hh = jax.random.uniform(k2, (4 * hidden_dim, hidden_dim), jnp.float32, -bound, bound)
        b_ih = jax.random.uniform(k3, (4 * hidden_dim,), jnp.float32, -bound, bound)
        b_hh = jax.random.uniform(k4, (4 * hidden_dim,), jnp.float32, -bound, bound)
        params["lstm"].append((w_ih, w_hh, b_ih, b_hh))
    key, k1, k2, k3, k4 = jax.random.split(key, 5)
    params["heads"]["w_event"] = jax.random.uniform(
        k1, (num_event_classes, hidden_dim), jnp.float32, -bound, bound)
    params["heads"]["b_event"] = jax.random.uniform(
        k2, (num_event_classes,), jnp.float32, -bound, bound)
    params["heads"]["w_reg"] = jax.random.uniform(
        k3, (num_reg_targets, hidden_dim), jnp.float32, -bound, bound)
    params["heads"]["b_reg"] = jax.random.uniform(
        k4, (num_reg_targets,), jnp.float32, -bound, bound)
    return params


@functools.partial(jax.jit, static_argnames=("hidden_dim", "num_layers"))
def multitask_lstm_forward(x, params, *, hidden_dim, num_layers):
    """x: (batch, seq, input_dim) float32 -> (event_logits, reg_preds)."""
    B, T, D = x.shape
    H = hidden_dim
    C = params["heads"]["w_event"].shape[0]
    R = params["heads"]["w_reg"].shape[0]
    n_heads = C + R

    B_TILE = 8                                      # f32 sublane width
    B_pad = ((B + B_TILE - 1) // B_TILE) * B_TILE   # pad batch to sublane multiple
    nb = B_pad // B_TILE                            # batch tiles -> parallel grid
    NH_pad = ((n_heads + 127) // 128) * 128         # lane-dense fused head output

    # Pack x into per-batch-tile, time-major slabs: (nb, T*B_TILE, D).
    xp = jnp.pad(x.astype(jnp.float32), ((0, B_pad - B), (0, 0), (0, 0)))
    x_tiles = (xp.reshape(nb, B_TILE, T, D)
                 .transpose(0, 2, 1, 3)
                 .reshape(nb, T * B_TILE, D))

    # Layer 0 kept separate so its input projection can be hoisted in-kernel.
    w_ih0, w_hh0, b_ih0, b_hh0 = params["lstm"][0]
    kernel_inputs = [
        x_tiles,
        jnp.transpose(w_ih0),                       # (D, 4H)
        (b_ih0 + b_hh0).reshape(1, -1),             # (1, 4H)
        jnp.transpose(w_hh0),                       # (H, 4H)
    ]
    # Layers > 0: stack [W_ih^T; W_hh^T] so each step is one fused matmul.
    for l in range(1, num_layers):
        w_ih, w_hh, b_ih, b_hh = params["lstm"][l]
        kernel_inputs.append(
            jnp.concatenate([jnp.transpose(w_ih), jnp.transpose(w_hh)], axis=0))
        kernel_inputs.append((b_ih + b_hh).reshape(1, -1))
    # Both heads fused into one lane-dense matmul (zero-padded to 128 lanes).
    w_heads = jnp.concatenate([jnp.transpose(params["heads"]["w_event"]),
                               jnp.transpose(params["heads"]["w_reg"])], axis=1)
    b_heads = jnp.concatenate([params["heads"]["b_event"],
                               params["heads"]["b_reg"]]).reshape(1, -1)
    kernel_inputs.append(jnp.pad(w_heads, ((0, 0), (0, NH_pad - n_heads))))
    kernel_inputs.append(jnp.pad(b_heads, ((0, 0), (0, NH_pad - n_heads))))

    kernel = make_lstm_heads_kernel(num_layers, H, T, B_TILE)

    # x: one batch tile per grid step; weights: full arrays, resident in VMEM.
    in_specs = [pl.BlockSpec((None, T * B_TILE, D), lambda i: (i, 0, 0))]
    for w in kernel_inputs[1:]:
        in_specs.append(pl.BlockSpec(w.shape, lambda i: (0, 0)))

    out = pl.pallas_call(
        kernel,
        grid=(nb,),
        out_shape=jax.ShapeDtypeStruct((B_pad, NH_pad), jnp.float32),
        in_specs=in_specs,
        out_specs=pl.BlockSpec((B_TILE, NH_pad), lambda i: (i, 0)),
        compiler_params=pltpu.CompilerParams(
            dimension_semantics=("parallel",)),   # v7x: 2 TCs split batch tiles
    )(*kernel_inputs)

    ev = out[:B, :C]
    reg = out[:B, C:C + R]
    return ev, reg


def reference_forward(x, params, hidden_dim, num_layers):
    """Pure-JAX reference matching nn.LSTM (batch_first) + heads, eval mode."""
    B, T, D = x.shape
    H = hidden_dim
    inp_seq = x.astype(jnp.float32)
    for l in range(num_layers):
        w_ih, w_hh, b_ih, b_hh = params["lstm"][l]
        h = jnp.zeros((B, H), jnp.float32)
        c = jnp.zeros((B, H), jnp.float32)
        outs = []
        for t in range(T):
            xt = inp_seq[:, t, :]
            gates = xt @ w_ih.T + h @ w_hh.T + b_ih + b_hh
            i = jax.nn.sigmoid(gates[:, 0 * H:1 * H])
            f = jax.nn.sigmoid(gates[:, 1 * H:2 * H])
            g = jnp.tanh(gates[:, 2 * H:3 * H])
            o = jax.nn.sigmoid(gates[:, 3 * H:4 * H])
            c = f * c + i * g
            h = o * jnp.tanh(c)
            outs.append(h)
        inp_seq = jnp.stack(outs, axis=1)
    h_last = inp_seq[:, -1, :]
    ev = h_last @ params["heads"]["w_event"].T + params["heads"]["b_event"]
    reg = h_last @ params["heads"]["w_reg"].T + params["heads"]["b_reg"]
    return ev, reg


if __name__ == "__main__":
    # Small shapes consistent with the module's forward.
    batch, seq, input_dim = 2, 8, 16
    hidden_dim, num_layers = 32, 2
    num_event_classes = 5
    num_reg_targets = 3  # len(REG_TARGETS)

    key = jax.random.PRNGKey(0)
    key, kx, kp = jax.random.split(key, 3)
    x = jax.random.normal(kx, (batch, seq, input_dim), jnp.float32)
    params = init_params(kp, input_dim, hidden_dim, num_layers,
                         num_event_classes, num_reg_targets)

    ev, reg = multitask_lstm_forward(x, params, hidden_dim=hidden_dim,
                                     num_layers=num_layers)
    jax.block_until_ready((ev, reg))

    ev_ref, reg_ref = reference_forward(x, params, hidden_dim, num_layers)
    assert ev.shape == (batch, num_event_classes)
    assert reg.shape == (batch, num_reg_targets)
    assert jnp.allclose(ev, ev_ref, atol=1e-4, rtol=1e-4)
    assert jnp.allclose(reg, reg_ref, atol=1e-4, rtol=1e-4)

    print("KERNEL_OK")
</pallas_src>

<mosaic_0001>
module attributes {stable_mosaic.version = 11 : i64} {
  func.func @kernel(%arg0: i32, %arg1: memref<1x64x16xf32, #tpu.memory_space<vmem>>, %arg2: memref<16x128xf32, #tpu.memory_space<vmem>>, %arg3: memref<1x128xf32, #tpu.memory_space<vmem>>, %arg4: memref<32x128xf32, #tpu.memory_space<vmem>>, %arg5: memref<64x128xf32, #tpu.memory_space<vmem>>, %arg6: memref<1x128xf32, #tpu.memory_space<vmem>>, %arg7: memref<32x128xf32, #tpu.memory_space<vmem>>, %arg8: memref<1x128xf32, #tpu.memory_space<vmem>>, %arg9: memref<8x128xf32, #tpu.memory_space<vmem>>) attributes {dimension_semantics = [#tpu.dimension_semantics<parallel>], iteration_bounds = array<i64: 1>, scalar_prefetch = 0 : i64, scratch_operands = 0 : i64, tpu.core_type = #tpu.core_type<tc>, window_params = [{transform_indices = @transform_0, window_bounds = array<i64: 1, 64, 16>}, {pipeline_mode = #tpu.pipeline_mode<synchronous>, transform_indices = @transform_1, window_bounds = array<i64: 16, 128>}, {pipeline_mode = #tpu.pipeline_mode<synchronous>, transform_indices = @transform_2, window_bounds = array<i64: 1, 128>}, {pipeline_mode = #tpu.pipeline_mode<synchronous>, transform_indices = @transform_3, window_bounds = array<i64: 32, 128>}, {pipeline_mode = #tpu.pipeline_mode<synchronous>, transform_indices = @transform_4, window_bounds = array<i64: 64, 128>}, {pipeline_mode = #tpu.pipeline_mode<synchronous>, transform_indices = @transform_5, window_bounds = array<i64: 1, 128>}, {pipeline_mode = #tpu.pipeline_mode<synchronous>, transform_indices = @transform_6, window_bounds = array<i64: 32, 128>}, {pipeline_mode = #tpu.pipeline_mode<synchronous>, transform_indices = @transform_7, window_bounds = array<i64: 1, 128>}, {transform_indices = @transform_8, window_bounds = array<i64: 8, 128>}]} {
    %c0 = arith.constant 0 : index
    %c0_0 = arith.constant 0 : index
    %c0_1 = arith.constant 0 : index
    %0 = vector.load %arg1[%c0, %c0_0, %c0_1] : memref<1x64x16xf32, #tpu.memory_space<vmem>>, vector<1x64x16xf32>
    %1 = vector.shape_cast %0 : vector<1x64x16xf32> to vector<64x16xf32>
    %c0_2 = arith.constant 0 : index
    %c0_3 = arith.constant 0 : index
    %2 = vector.load %arg2[%c0_2, %c0_3] : memref<16x128xf32, #tpu.memory_space<vmem>>, vector<16x128xf32>
    %cst = arith.constant dense<0.000000e+00> : vector<64x128xf32>
    %3 = tpu.matmul %1, %2, %cst {dimension_numbers = #tpu.dot_dimension_numbers<[1], [0], [0], [1], [0, 0, 1, 1], [], []>} : vector<64x16xf32>, vector<16x128xf32>, vector<64x128xf32> -> vector<64x128xf32>
    %c0_4 = arith.constant 0 : index
    %c0_5 = arith.constant 0 : index
    %4 = vector.load %arg3[%c0_4, %c0_5] : memref<1x128xf32, #tpu.memory_space<vmem>>, vector<1x128xf32>
    %5 = vector.broadcast %4 : vector<1x128xf32> to vector<64x128xf32>
    %6 = arith.addf %3, %5 : vector<64x128xf32>
    %c0_6 = arith.constant 0 : index
    %c0_7 = arith.constant 0 : index
    %7 = vector.load %arg4[%c0_6, %c0_7] : memref<32x128xf32, #tpu.memory_space<vmem>>, vector<32x128xf32>
    %c0_8 = arith.constant 0 : index
    %c0_9 = arith.constant 0 : index
    %8 = vector.load %arg5[%c0_8, %c0_9] : memref<64x128xf32, #tpu.memory_space<vmem>>, vector<64x128xf32>
    %c0_10 = arith.constant 0 : index
    %c0_11 = arith.constant 0 : index
    %9 = vector.load %arg6[%c0_10, %c0_11] : memref<1x128xf32, #tpu.memory_space<vmem>>, vector<1x128xf32>
    %10 = vector.shape_cast %9 : vector<1x128xf32> to vector<1x128xf32>
    %11 = vector.broadcast %10 : vector<1x128xf32> to vector<8x128xf32>
    %cst_12 = arith.constant 0.000000e+00 : f32
    %12 = vector.broadcast %cst_12 : f32 to vector<8x32xf32>
    %13 = vector.extract_strided_slice %6 {offsets = [0, 0], sizes = [8, 128], strides = [1, 1]} : vector<64x128xf32> to vector<8x128xf32>
    %cst_13 = arith.constant dense<0.000000e+00> : vector<8x128xf32>
    %14 = tpu.matmul %12, %7, %cst_13 {dimension_numbers = #tpu.dot_dimension_numbers<[1], [0], [0], [1], [0, 0, 1, 1], [], []>} : vector<8x32xf32>, vector<32x128xf32>, vector<8x128xf32> -> vector<8x128xf32>
    %15 = arith.addf %13, %14 : vector<8x128xf32>
    %16 = arith.negf %15 : vector<8x128xf32>
    %17 = math.exp %16 : vector<8x128xf32>
    %cst_14 = arith.constant 1.000000e+00 : f32
    %18 = vector.broadcast %cst_14 : f32 to vector<8x128xf32>
    %19 = arith.addf %18, %17 : vector<8x128xf32>
    %20 = arith.divf %18, %19 : vector<8x128xf32>
    %21 = math.tanh %15 : vector<8x128xf32>
    %22 = vector.extract_strided_slice %20 {offsets = [0, 0], sizes = [8, 32], strides = [1, 1]} : vector<8x128xf32> to vector<8x32xf32>
    %23 = vector.extract_strided_slice %20 {offsets = [0, 32], sizes = [8, 32], strides = [1, 1]} : vector<8x128xf32> to vector<8x32xf32>
    %24 = vector.extract_strided_slice %21 {offsets = [0, 64], sizes = [8, 32], strides = [1, 1]} : vector<8x128xf32> to vector<8x32xf32>
    %25 = vector.extract_strided_slice %20 {offsets = [0, 96], sizes = [8, 32], strides = [1, 1]} : vector<8x128xf32> to vector<8x32xf32>
    %26 = arith.mulf %23, %12 : vector<8x32xf32>
    %27 = arith.mulf %22, %24 : vector<8x32xf32>
    %28 = arith.addf %26, %27 : vector<8x32xf32>
    %29 = math.tanh %28 : vector<8x32xf32>
    %30 = arith.mulf %25, %29 : vector<8x32xf32>
    %31 = tpu.concatenate %30, %12 in 1 : vector<8x32xf32>, vector<8x32xf32> -> vector<8x64xf32>
    %cst_15 = arith.constant dense<0.000000e+00> : vector<8x128xf32>
    %32 = tpu.matmul %31, %8, %cst_15 {dimension_numbers = #tpu.dot_dimension_numbers<[1], [0], [0], [1], [0, 0, 1, 1], [], []>} : vector<8x64xf32>, vector<64x128xf32>, vector<8x128xf32> -> vector<8x128xf32>
    %33 = arith.addf %32, %11 : vector<8x128xf32>
    %34 = arith.negf %33 : vector<8x128xf32>
    %35 = math.exp %34 : vector<8x128xf32>
    %cst_16 = arith.constant 1.000000e+00 : f32
    %36 = vector.broadcast %cst_16 : f32 to vector<8x128xf32>
    %37 = arith.addf %36, %35 : vector<8x128xf32>
    %38 = arith.divf %36, %37 : vector<8x128xf32>
    %39 = math.tanh %33 : vector<8x128xf32>
    %40 = vector.extract_strided_slice %38 {offsets = [0, 0], sizes = [8, 32], strides = [1, 1]} : vector<8x128xf32> to vector<8x32xf32>
    %41 = vector.extract_strided_slice %38 {offsets = [0, 32], sizes = [8, 32], strides = [1, 1]} : vector<8x128xf32> to vector<8x32xf32>
    %42 = vector.extract_strided_slice %39 {offsets = [0, 64], sizes = [8, 32], strides = [1, 1]} : vector<8x128xf32> to vector<8x32xf32>
    %43 = vector.extract_strided_slice %38 {offsets = [0, 96], sizes = [8, 32], strides = [1, 1]} : vector<8x128xf32> to vector<8x32xf32>
    %44 = arith.mulf %41, %12 : vector<8x32xf32>
    %45 = arith.mulf %40, %42 : vector<8x32xf32>
    %46 = arith.addf %44, %45 : vector<8x32xf32>
    %47 = math.tanh %46 : vector<8x32xf32>
    %48 = arith.mulf %43, %47 : vector<8x32xf32>
    %49 = vector.extract_strided_slice %6 {offsets = [8, 0], sizes = [8, 128], strides = [1, 1]} : vector<64x128xf32> to vector<8x128xf32>
    %cst_17 = arith.constant dense<0.000000e+00> : vector<8x128xf32>
    %50 = tpu.matmul %30, %7, %cst_17 {dimension_numbers = #tpu.dot_dimension_numbers<[1], [0], [0], [1], [0, 0, 1, 1], [], []>} : vector<8x32xf32>, vector<32x128xf32>, vector<8x128xf32> -> vector<8x128xf32>
    %51 = arith.addf %49, %50 : vector<8x128xf32>
    %52 = arith.negf %51 : vector<8x128xf32>
    %53 = math.exp %52 : vector<8x128xf32>
    %cst_18 = arith.constant 1.000000e+00 : f32
    %54 = vector.broadcast %cst_18 : f32 to vector<8x128xf32>
    %55 = arith.addf %54, %53 : vector<8x128xf32>
    %56 = arith.divf %54, %55 : vector<8x128xf32>
    %57 = math.tanh %51 : vector<8x128xf32>
    %58 = vector.extract_strided_slice %56 {offsets = [0, 0], sizes = [8, 32], strides = [1, 1]} : vector<8x128xf32> to vector<8x32xf32>
    %59 = vector.extract_strided_slice %56 {offsets = [0, 32], sizes = [8, 32], strides = [1, 1]} : vector<8x128xf32> to vector<8x32xf32>
    %60 = vector.extract_strided_slice %57 {offsets = [0, 64], sizes = [8, 32], strides = [1, 1]} : vector<8x128xf32> to vector<8x32xf32>
    %61 = vector.extract_strided_slice %56 {offsets = [0, 96], sizes = [8, 32], strides = [1, 1]} : vector<8x128xf32> to vector<8x32xf32>
    %62 = arith.mulf %59, %28 : vector<8x32xf32>
    %63 = arith.mulf %58, %60 : vector<8x32xf32>
    %64 = arith.addf %62, %63 : vector<8x32xf32>
    %65 = math.tanh %64 : vector<8x32xf32>
    %66 = arith.mulf %61, %65 : vector<8x32xf32>
    %67 = tpu.concatenate %66, %48 in 1 : vector<8x32xf32>, vector<8x32xf32> -> vector<8x64xf32>
    %cst_19 = arith.constant dense<0.000000e+00> : vector<8x128xf32>
    %68 = tpu.matmul %67, %8, %cst_19 {dimension_numbers = #tpu.dot_dimension_numbers<[1], [0], [0], [1], [0, 0, 1, 1], [], []>} : vector<8x64xf32>, vector<64x128xf32>, vector<8x128xf32> -> vector<8x128xf32>
    %69 = arith.addf %68, %11 : vector<8x128xf32>
    %70 = arith.negf %69 : vector<8x128xf32>
    %71 = math.exp %70 : vector<8x128xf32>
    %cst_20 = arith.constant 1.000000e+00 : f32
    %72 = vector.broadcast %cst_20 : f32 to vector<8x128xf32>
    %73 = arith.addf %72, %71 : vector<8x128xf32>
    %74 = arith.divf %72, %73 : vector<8x128xf32>
    %75 = math.tanh %69 : vector<8x128xf32>
    %76 = vector.extract_strided_slice %74 {offsets = [0, 0], sizes = [8, 32], strides = [1, 1]} : vector<8x128xf32> to vector<8x32xf32>
    %77 = vector.extract_strided_slice %74 {offsets = [0, 32], sizes = [8, 32], strides = [1, 1]} : vector<8x128xf32> to vector<8x32xf32>
    %78 = vector.extract_strided_slice %75 {offsets = [0, 64], sizes = [8, 32], strides = [1, 1]} : vector<8x128xf32> to vector<8x32xf32>
    %79 = vector.extract_strided_slice %74 {offsets = [0, 96], sizes = [8, 32], strides = [1, 1]} : vector<8x128xf32> to vector<8x32xf32>
    %80 = arith.mulf %77, %46 : vector<8x32xf32>
    %81 = arith.mulf %76, %78 : vector<8x32xf32>
    %82 = arith.addf %80, %81 : vector<8x32xf32>
    %83 = math.tanh %82 : vector<8x32xf32>
    %84 = arith.mulf %79, %83 : vector<8x32xf32>
    %85 = vector.extract_strided_slice %6 {offsets = [16, 0], sizes = [8, 128], strides = [1, 1]} : vector<64x128xf32> to vector<8x128xf32>
    %cst_21 = arith.constant dense<0.000000e+00> : vector<8x128xf32>
    %86 = tpu.matmul %66, %7, %cst_21 {dimension_numbers = #tpu.dot_dimension_numbers<[1], [0], [0], [1], [0, 0, 1, 1], [], []>} : vector<8x32xf32>, vector<32x128xf32>, vector<8x128xf32> -> vector<8x128xf32>
    %87 = arith.addf %85, %86 : vector<8x128xf32>
    %88 = arith.negf %87 : vector<8x128xf32>
    %89 = math.exp %88 : vector<8x128xf32>
    %cst_22 = arith.constant 1.000000e+00 : f32
    %90 = vector.broadcast %cst_22 : f32 to vector<8x128xf32>
    %91 = arith.addf %90, %89 : vector<8x128xf32>
    %92 = arith.divf %90, %91 : vector<8x128xf32>
    %93 = math.tanh %87 : vector<8x128xf32>
    %94 = vector.extract_strided_slice %92 {offsets = [0, 0], sizes = [8, 32], strides = [1, 1]} : vector<8x128xf32> to vector<8x32xf32>
    %95 = vector.extract_strided_slice %92 {offsets = [0, 32], sizes = [8, 32], strides = [1, 1]} : vector<8x128xf32> to vector<8x32xf32>
    %96 = vector.extract_strided_slice %93 {offsets = [0, 64], sizes = [8, 32], strides = [1, 1]} : vector<8x128xf32> to vector<8x32xf32>
    %97 = vector.extract_strided_slice %92 {offsets = [0, 96], sizes = [8, 32], strides = [1, 1]} : vector<8x128xf32> to vector<8x32xf32>
    %98 = arith.mulf %95, %64 : vector<8x32xf32>
    %99 = arith.mulf %94, %96 : vector<8x32xf32>
    %100 = arith.addf %98, %99 : vector<8x32xf32>
    %101 = math.tanh %100 : vector<8x32xf32>
    %102 = arith.mulf %97, %101 : vector<8x32xf32>
    %103 = tpu.concatenate %102, %84 in 1 : vector<8x32xf32>, vector<8x32xf32> -> vector<8x64xf32>
    %cst_23 = arith.constant dense<0.000000e+00> : vector<8x128xf32>
    %104 = tpu.matmul %103, %8, %cst_23 {dimension_numbers = #tpu.dot_dimension_numbers<[1], [0], [0], [1], [0, 0, 1, 1], [], []>} : vector<8x64xf32>, vector<64x128xf32>, vector<8x128xf32> -> vector<8x128xf32>
    %105 = arith.addf %104, %11 : vector<8x128xf32>
    %106 = arith.negf %105 : vector<8x128xf32>
    %107 = math.exp %106 : vector<8x128xf32>
    %cst_24 = arith.constant 1.000000e+00 : f32
    %108 = vector.broadcast %cst_24 : f32 to vector<8x128xf32>
    %109 = arith.addf %108, %107 : vector<8x128xf32>
    %110 = arith.divf %108, %109 : vector<8x128xf32>
    %111 = math.tanh %105 : vector<8x128xf32>
    %112 = vector.extract_strided_slice %110 {offsets = [0, 0], sizes = [8, 32], strides = [1, 1]} : vector<8x128xf32> to vector<8x32xf32>
    %113 = vector.extract_strided_slice %110 {offsets = [0, 32], sizes = [8, 32], strides = [1, 1]} : vector<8x128xf32> to vector<8x32xf32>
    %114 = vector.extract_strided_slice %111 {offsets = [0, 64], sizes = [8, 32], strides = [1, 1]} : vector<8x128xf32> to vector<8x32xf32>
    %115 = vector.extract_strided_slice %110 {offsets = [0, 96], sizes = [8, 32], strides = [1, 1]} : vector<8x128xf32> to vector<8x32xf32>
    %116 = arith.mulf %113, %82 : vector<8x32xf32>
    %117 = arith.mulf %112, %114 : vector<8x32xf32>
    %118 = arith.addf %116, %117 : vector<8x32xf32>
    %119 = math.tanh %118 : vector<8x32xf32>
    %120 = arith.mulf %115, %119 : vector<8x32xf32>
    %121 = vector.extract_strided_slice %6 {offsets = [24, 0], sizes = [8, 128], strides = [1, 1]} : vector<64x128xf32> to vector<8x128xf32>
    %cst_25 = arith.constant dense<0.000000e+00> : vector<8x128xf32>
    %122 = tpu.matmul %102, %7, %cst_25 {dimension_numbers = #tpu.dot_dimension_numbers<[1], [0], [0], [1], [0, 0, 1, 1], [], []>} : vector<8x32xf32>, vector<32x128xf32>, vector<8x128xf32> -> vector<8x128xf32>
    %123 = arith.addf %121, %122 : vector<8x128xf32>
    %124 = arith.negf %123 : vector<8x128xf32>
    %125 = math.exp %124 : vector<8x128xf32>
    %cst_26 = arith.constant 1.000000e+00 : f32
    %126 = vector.broadcast %cst_26 : f32 to vector<8x128xf32>
    %127 = arith.addf %126, %125 : vector<8x128xf32>
    %128 = arith.divf %126, %127 : vector<8x128xf32>
    %129 = math.tanh %123 : vector<8x128xf32>
    %130 = vector.extract_strided_slice %128 {offsets = [0, 0], sizes = [8, 32], strides = [1, 1]} : vector<8x128xf32> to vector<8x32xf32>
    %131 = vector.extract_strided_slice %128 {offsets = [0, 32], sizes = [8, 32], strides = [1, 1]} : vector<8x128xf32> to vector<8x32xf32>
    %132 = vector.extract_strided_slice %129 {offsets = [0, 64], sizes = [8, 32], strides = [1, 1]} : vector<8x128xf32> to vector<8x32xf32>
    %133 = vector.extract_strided_slice %128 {offsets = [0, 96], sizes = [8, 32], strides = [1, 1]} : vector<8x128xf32> to vector<8x32xf32>
    %134 = arith.mulf %131, %100 : vector<8x32xf32>
    %135 = arith.mulf %130, %132 : vector<8x32xf32>
    %136 = arith.addf %134, %135 : vector<8x32xf32>
    %137 = math.tanh %136 : vector<8x32xf32>
    %138 = arith.mulf %133, %137 : vector<8x32xf32>
    %139 = tpu.concatenate %138, %120 in 1 : vector<8x32xf32>, vector<8x32xf32> -> vector<8x64xf32>
    %cst_27 = arith.constant dense<0.000000e+00> : vector<8x128xf32>
    %140 = tpu.matmul %139, %8, %cst_27 {dimension_numbers = #tpu.dot_dimension_numbers<[1], [0], [0], [1], [0, 0, 1, 1], [], []>} : vector<8x64xf32>, vector<64x128xf32>, vector<8x128xf32> -> vector<8x128xf32>
    %141 = arith.addf %140, %11 : vector<8x128xf32>
    %142 = arith.negf %141 : vector<8x128xf32>
    %143 = math.exp %142 : vector<8x128xf32>
    %cst_28 = arith.constant 1.000000e+00 : f32
    %144 = vector.broadcast %cst_28 : f32 to vector<8x128xf32>
    %145 = arith.addf %144, %143 : vector<8x128xf32>
    %146 = arith.divf %144, %145 : vector<8x128xf32>
    %147 = math.tanh %141 : vector<8x128xf32>
    %148 = vector.extract_strided_slice %146 {offsets = [0, 0], sizes = [8, 32], strides = [1, 1]} : vector<8x128xf32> to vector<8x32xf32>
    %149 = vector.extract_strided_slice %146 {offsets = [0, 32], sizes = [8, 32], strides = [1, 1]} : vector<8x128xf32> to vector<8x32xf32>
    %150 = vector.extract_strided_slice %147 {offsets = [0, 64], sizes = [8, 32], strides = [1, 1]} : vector<8x128xf32> to vector<8x32xf32>
    %151 = vector.extract_strided_slice %146 {offsets = [0, 96], sizes = [8, 32], strides = [1, 1]} : vector<8x128xf32> to vector<8x32xf32>
    %152 = arith.mulf %149, %118 : vector<8x32xf32>
    %153 = arith.mulf %148, %150 : vector<8x32xf32>
    %154 = arith.addf %152, %153 : vector<8x32xf32>
    %155 = math.tanh %154 : vector<8x32xf32>
    %156 = arith.mulf %151, %155 : vector<8x32xf32>
    %157 = vector.extract_strided_slice %6 {offsets = [32, 0], sizes = [8, 128], strides = [1, 1]} : vector<64x128xf32> to vector<8x128xf32>
    %cst_29 = arith.constant dense<0.000000e+00> : vector<8x128xf32>
    %158 = tpu.matmul %138, %7, %cst_29 {dimension_numbers = #tpu.dot_dimension_numbers<[1], [0], [0], [1], [0, 0, 1, 1], [], []>} : vector<8x32xf32>, vector<32x128xf32>, vector<8x128xf32> -> vector<8x128xf32>
    %159 = arith.addf %157, %158 : vector<8x128xf32>
    %160 = arith.negf %159 : vector<8x128xf32>
    %161 = math.exp %160 : vector<8x128xf32>
    %cst_30 = arith.constant 1.000000e+00 : f32
    %162 = vector.broadcast %cst_30 : f32 to vector<8x128xf32>
    %163 = arith.addf %162, %161 : vector<8x128xf32>
    %164 = arith.divf %162, %163 : vector<8x128xf32>
    %165 = math.tanh %159 : vector<8x128xf32>
    %166 = vector.extract_strided_slice %164 {offsets = [0, 0], sizes = [8, 32], strides = [1, 1]} : vector<8x128xf32> to vector<8x32xf32>
    %167 = vector.extract_strided_slice %164 {offsets = [0, 32], sizes = [8, 32], strides = [1, 1]} : vector<8x128xf32> to vector<8x32xf32>
    %168 = vector.extract_strided_slice %165 {offsets = [0, 64], sizes = [8, 32], strides = [1, 1]} : vector<8x128xf32> to vector<8x32xf32>
    %169 = vector.extract_strided_slice %164 {offsets = [0, 96], sizes = [8, 32], strides = [1, 1]} : vector<8x128xf32> to vector<8x32xf32>
    %170 = arith.mulf %167, %136 : vector<8x32xf32>
    %171 = arith.mulf %166, %168 : vector<8x32xf32>
    %172 = arith.addf %170, %171 : vector<8x32xf32>
    %173 = math.tanh %172 : vector<8x32xf32>
    %174 = arith.mulf %169, %173 : vector<8x32xf32>
    %175 = tpu.concatenate %174, %156 in 1 : vector<8x32xf32>, vector<8x32xf32> -> vector<8x64xf32>
    %cst_31 = arith.constant dense<0.000000e+00> : vector<8x128xf32>
    %176 = tpu.matmul %175, %8, %cst_31 {dimension_numbers = #tpu.dot_dimension_numbers<[1], [0], [0], [1], [0, 0, 1, 1], [], []>} : vector<8x64xf32>, vector<64x128xf32>, vector<8x128xf32> -> vector<8x128xf32>
    %177 = arith.addf %176, %11 : vector<8x128xf32>
    %178 = arith.negf %177 : vector<8x128xf32>
    %179 = math.exp %178 : vector<8x128xf32>
    %cst_32 = arith.constant 1.000000e+00 : f32
    %180 = vector.broadcast %cst_32 : f32 to vector<8x128xf32>
    %181 = arith.addf %180, %179 : vector<8x128xf32>
    %182 = arith.divf %180, %181 : vector<8x128xf32>
    %183 = math.tanh %177 : vector<8x128xf32>
    %184 = vector.extract_strided_slice %182 {offsets = [0, 0], sizes = [8, 32], strides = [1, 1]} : vector<8x128xf32> to vector<8x32xf32>
    %185 = vector.extract_strided_slice %182 {offsets = [0, 32], sizes = [8, 32], strides = [1, 1]} : vector<8x128xf32> to vector<8x32xf32>
    %186 = vector.extract_strided_slice %183 {offsets = [0, 64], sizes = [8, 32], strides = [1, 1]} : vector<8x128xf32> to vector<8x32xf32>
    %187 = vector.extract_strided_slice %182 {offsets = [0, 96], sizes = [8, 32], strides = [1, 1]} : vector<8x128xf32> to vector<8x32xf32>
    %188 = arith.mulf %185, %154 : vector<8x32xf32>
    %189 = arith.mulf %184, %186 : vector<8x32xf32>
    %190 = arith.addf %188, %189 : vector<8x32xf32>
    %191 = math.tanh %190 : vector<8x32xf32>
    %192 = arith.mulf %187, %191 : vector<8x32xf32>
    %193 = vector.extract_strided_slice %6 {offsets = [40, 0], sizes = [8, 128], strides = [1, 1]} : vector<64x128xf32> to vector<8x128xf32>
    %cst_33 = arith.constant dense<0.000000e+00> : vector<8x128xf32>
    %194 = tpu.matmul %174, %7, %cst_33 {dimension_numbers = #tpu.dot_dimension_numbers<[1], [0], [0], [1], [0, 0, 1, 1], [], []>} : vector<8x32xf32>, vector<32x128xf32>, vector<8x128xf32> -> vector<8x128xf32>
    %195 = arith.addf %193, %194 : vector<8x128xf32>
    %196 = arith.negf %195 : vector<8x128xf32>
    %197 = math.exp %196 : vector<8x128xf32>
    %cst_34 = arith.constant 1.000000e+00 : f32
    %198 = vector.broadcast %cst_34 : f32 to vector<8x128xf32>
    %199 = arith.addf %198, %197 : vector<8x128xf32>
    %200 = arith.divf %198, %199 : vector<8x128xf32>
    %201 = math.tanh %195 : vector<8x128xf32>
    %202 = vector.extract_strided_slice %200 {offsets = [0, 0], sizes = [8, 32], strides = [1, 1]} : vector<8x128xf32> to vector<8x32xf32>
    %203 = vector.extract_strided_slice %200 {offsets = [0, 32], sizes = [8, 32], strides = [1, 1]} : vector<8x128xf32> to vector<8x32xf32>
    %204 = vector.extract_strided_slice %201 {offsets = [0, 64], sizes = [8, 32], strides = [1, 1]} : vector<8x128xf32> to vector<8x32xf32>
    %205 = vector.extract_strided_slice %200 {offsets = [0, 96], sizes = [8, 32], strides = [1, 1]} : vector<8x128xf32> to vector<8x32xf32>
    %206 = arith.mulf %203, %172 : vector<8x32xf32>
    %207 = arith.mulf %202, %204 : vector<8x32xf32>
    %208 = arith.addf %206, %207 : vector<8x32xf32>
    %209 = math.tanh %208 : vector<8x32xf32>
    %210 = arith.mulf %205, %209 : vector<8x32xf32>
    %211 = tpu.concatenate %210, %192 in 1 : vector<8x32xf32>, vector<8x32xf32> -> vector<8x64xf32>
    %cst_35 = arith.constant dense<0.000000e+00> : vector<8x128xf32>
    %212 = tpu.matmul %211, %8, %cst_35 {dimension_numbers = #tpu.dot_dimension_numbers<[1], [0], [0], [1], [0, 0, 1, 1], [], []>} : vector<8x64xf32>, vector<64x128xf32>, vector<8x128xf32> -> vector<8x128xf32>
    %213 = arith.addf %212, %11 : vector<8x128xf32>
    %214 = arith.negf %213 : vector<8x128xf32>
    %215 = math.exp %214 : vector<8x128xf32>
    %cst_36 = arith.constant 1.000000e+00 : f32
    %216 = vector.broadcast %cst_36 : f32 to vector<8x128xf32>
    %217 = arith.addf %216, %215 : vector<8x128xf32>
    %218 = arith.divf %216, %217 : vector<8x128xf32>
    %219 = math.tanh %213 : vector<8x128xf32>
    %220 = vector.extract_strided_slice %218 {offsets = [0, 0], sizes = [8, 32], strides = [1, 1]} : vector<8x128xf32> to vector<8x32xf32>
    %221 = vector.extract_strided_slice %218 {offsets = [0, 32], sizes = [8, 32], strides = [1, 1]} : vector<8x128xf32> to vector<8x32xf32>
    %222 = vector.extract_strided_slice %219 {offsets = [0, 64], sizes = [8, 32], strides = [1, 1]} : vector<8x128xf32> to vector<8x32xf32>
    %223 = vector.extract_strided_slice %218 {offsets = [0, 96], sizes = [8, 32], strides = [1, 1]} : vector<8x128xf32> to vector<8x32xf32>
    %224 = arith.mulf %221, %190 : vector<8x32xf32>
    %225 = arith.mulf %220, %222 : vector<8x32xf32>
    %226 = arith.addf %224, %225 : vector<8x32xf32>
    %227 = math.tanh %226 : vector<8x32xf32>
    %228 = arith.mulf %223, %227 : vector<8x32xf32>
    %229 = vector.extract_strided_slice %6 {offsets = [48, 0], sizes = [8, 128], strides = [1, 1]} : vector<64x128xf32> to vector<8x128xf32>
    %cst_37 = arith.constant dense<0.000000e+00> : vector<8x128xf32>
    %230 = tpu.matmul %210, %7, %cst_37 {dimension_numbers = #tpu.dot_dimension_numbers<[1], [0], [0], [1], [0, 0, 1, 1], [], []>} : vector<8x32xf32>, vector<32x128xf32>, vector<8x128xf32> -> vector<8x128xf32>
    %231 = arith.addf %229, %230 : vector<8x128xf32>
    %232 = arith.negf %231 : vector<8x128xf32>
    %233 = math.exp %232 : vector<8x128xf32>
    %cst_38 = arith.constant 1.000000e+00 : f32
    %234 = vector.broadcast %cst_38 : f32 to vector<8x128xf32>
    %235 = arith.addf %234, %233 : vector<8x128xf32>
    %236 = arith.divf %234, %235 : vector<8x128xf32>
    %237 = math.tanh %231 : vector<8x128xf32>
    %238 = vector.extract_strided_slice %236 {offsets = [0, 0], sizes = [8, 32], strides = [1, 1]} : vector<8x128xf32> to vector<8x32xf32>
    %239 = vector.extract_strided_slice %236 {offsets = [0, 32], sizes = [8, 32], strides = [1, 1]} : vector<8x128xf32> to vector<8x32xf32>
    %240 = vector.extract_strided_slice %237 {offsets = [0, 64], sizes = [8, 32], strides = [1, 1]} : vector<8x128xf32> to vector<8x32xf32>
    %241 = vector.extract_strided_slice %236 {offsets = [0, 96], sizes = [8, 32], strides = [1, 1]} : vector<8x128xf32> to vector<8x32xf32>
    %242 = arith.mulf %239, %208 : vector<8x32xf32>
    %243 = arith.mulf %238, %240 : vector<8x32xf32>
    %244 = arith.addf %242, %243 : vector<8x32xf32>
    %245 = math.tanh %244 : vector<8x32xf32>
    %246 = arith.mulf %241, %245 : vector<8x32xf32>
    %247 = tpu.concatenate %246, %228 in 1 : vector<8x32xf32>, vector<8x32xf32> -> vector<8x64xf32>
    %cst_39 = arith.constant dense<0.000000e+00> : vector<8x128xf32>
    %248 = tpu.matmul %247, %8, %cst_39 {dimension_numbers = #tpu.dot_dimension_numbers<[1], [0], [0], [1], [0, 0, 1, 1], [], []>} : vector<8x64xf32>, vector<64x128xf32>, vector<8x128xf32> -> vector<8x128xf32>
    %249 = arith.addf %248, %11 : vector<8x128xf32>
    %250 = arith.negf %249 : vector<8x128xf32>
    %251 = math.exp %250 : vector<8x128xf32>
    %cst_40 = arith.constant 1.000000e+00 : f32
    %252 = vector.broadcast %cst_40 : f32 to vector<8x128xf32>
    %253 = arith.addf %252, %251 : vector<8x128xf32>
    %254 = arith.divf %252, %253 : vector<8x128xf32>
    %255 = math.tanh %249 : vector<8x128xf32>
    %256 = vector.extract_strided_slice %254 {offsets = [0, 0], sizes = [8, 32], strides = [1, 1]} : vector<8x128xf32> to vector<8x32xf32>
    %257 = vector.extract_strided_slice %254 {offsets = [0, 32], sizes = [8, 32], strides = [1, 1]} : vector<8x128xf32> to vector<8x32xf32>
    %258 = vector.extract_strided_slice %255 {offsets = [0, 64], sizes = [8, 32], strides = [1, 1]} : vector<8x128xf32> to vector<8x32xf32>
    %259 = vector.extract_strided_slice %254 {offsets = [0, 96], sizes = [8, 32], strides = [1, 1]} : vector<8x128xf32> to vector<8x32xf32>
    %260 = arith.mulf %257, %226 : vector<8x32xf32>
    %261 = arith.mulf %256, %258 : vector<8x32xf32>
    %262 = arith.addf %260, %261 : vector<8x32xf32>
    %263 = math.tanh %262 : vector<8x32xf32>
    %264 = arith.mulf %259, %263 : vector<8x32xf32>
    %265 = vector.extract_strided_slice %6 {offsets = [56, 0], sizes = [8, 128], strides = [1, 1]} : vector<64x128xf32> to vector<8x128xf32>
    %cst_41 = arith.constant dense<0.000000e+00> : vector<8x128xf32>
    %266 = tpu.matmul %246, %7, %cst_41 {dimension_numbers = #tpu.dot_dimension_numbers<[1], [0], [0], [1], [0, 0, 1, 1], [], []>} : vector<8x32xf32>, vector<32x128xf32>, vector<8x128xf32> -> vector<8x128xf32>
    %267 = arith.addf %265, %266 : vector<8x128xf32>
    %268 = arith.negf %267 : vector<8x128xf32>
    %269 = math.exp %268 : vector<8x128xf32>
    %cst_42 = arith.constant 1.000000e+00 : f32
    %270 = vector.broadcast %cst_42 : f32 to vector<8x128xf32>
    %271 = arith.addf %270, %269 : vector<8x128xf32>
    %272 = arith.divf %270, %271 : vector<8x128xf32>
    %273 = math.tanh %267 : vector<8x128xf32>
    %274 = vector.extract_strided_slice %272 {offsets = [0, 0], sizes = [8, 32], strides = [1, 1]} : vector<8x128xf32> to vector<8x32xf32>
    %275 = vector.extract_strided_slice %272 {offsets = [0, 32], sizes = [8, 32], strides = [1, 1]} : vector<8x128xf32> to vector<8x32xf32>
    %276 = vector.extract_strided_slice %273 {offsets = [0, 64], sizes = [8, 32], strides = [1, 1]} : vector<8x128xf32> to vector<8x32xf32>
    %277 = vector.extract_strided_slice %272 {offsets = [0, 96], sizes = [8, 32], strides = [1, 1]} : vector<8x128xf32> to vector<8x32xf32>
    %278 = arith.mulf %275, %244 : vector<8x32xf32>
    %279 = arith.mulf %274, %276 : vector<8x32xf32>
    %280 = arith.addf %278, %279 : vector<8x32xf32>
    %281 = math.tanh %280 : vector<8x32xf32>
    %282 = arith.mulf %277, %281 : vector<8x32xf32>
    %283 = tpu.concatenate %282, %264 in 1 : vector<8x32xf32>, vector<8x32xf32> -> vector<8x64xf32>
    %cst_43 = arith.constant dense<0.000000e+00> : vector<8x128xf32>
    %284 = tpu.matmul %283, %8, %cst_43 {dimension_numbers = #tpu.dot_dimension_numbers<[1], [0], [0], [1], [0, 0, 1, 1], [], []>} : vector<8x64xf32>, vector<64x128xf32>, vector<8x128xf32> -> vector<8x128xf32>
    %285 = arith.addf %284, %11 : vector<8x128xf32>
    %286 = arith.negf %285 : vector<8x128xf32>
    %287 = math.exp %286 : vector<8x128xf32>
    %cst_44 = arith.constant 1.000000e+00 : f32
    %288 = vector.broadcast %cst_44 : f32 to vector<8x128xf32>
    %289 = arith.addf %288, %287 : vector<8x128xf32>
    %290 = arith.divf %288, %289 : vector<8x128xf32>
    %291 = math.tanh %285 : vector<8x128xf32>
    %292 = vector.extract_strided_slice %290 {offsets = [0, 0], sizes = [8, 32], strides = [1, 1]} : vector<8x128xf32> to vector<8x32xf32>
    %293 = vector.extract_strided_slice %290 {offsets = [0, 32], sizes = [8, 32], strides = [1, 1]} : vector<8x128xf32> to vector<8x32xf32>
    %294 = vector.extract_strided_slice %291 {offsets = [0, 64], sizes = [8, 32], strides = [1, 1]} : vector<8x128xf32> to vector<8x32xf32>
    %295 = vector.extract_strided_slice %290 {offsets = [0, 96], sizes = [8, 32], strides = [1, 1]} : vector<8x128xf32> to vector<8x32xf32>
    %296 = arith.mulf %293, %262 : vector<8x32xf32>
    %297 = arith.mulf %292, %294 : vector<8x32xf32>
    %298 = arith.addf %296, %297 : vector<8x32xf32>
    %299 = math.tanh %298 : vector<8x32xf32>
    %300 = arith.mulf %295, %299 : vector<8x32xf32>
    %c0_45 = arith.constant 0 : index
    %c0_46 = arith.constant 0 : index
    %301 = vector.load %arg7[%c0_45, %c0_46] : memref<32x128xf32, #tpu.memory_space<vmem>>, vector<32x128xf32>
    %cst_47 = arith.constant dense<0.000000e+00> : vector<8x128xf32>
    %302 = tpu.matmul %300, %301, %cst_47 {dimension_numbers = #tpu.dot_dimension_numbers<[1], [0], [0], [1], [0, 0, 1, 1], [], []>} : vector<8x32xf32>, vector<32x128xf32>, vector<8x128xf32> -> vector<8x128xf32>
    %c0_48 = arith.constant 0 : index
    %c0_49 = arith.constant 0 : index
    %303 = vector.load %arg8[%c0_48, %c0_49] : memref<1x128xf32, #tpu.memory_space<vmem>>, vector<1x128xf32>
    %304 = vector.broadcast %303 : vector<1x128xf32> to vector<8x128xf32>
    %305 = arith.addf %302, %304 : vector<8x128xf32>
    %c0_50 = arith.constant 0 : index
    %c0_51 = arith.constant 0 : index
    %306 = vector.load %arg9[%c0_50, %c0_51] : memref<8x128xf32, #tpu.memory_space<vmem>>, vector<8x128xf32>
    tpu.vector_store %arg9[%c0_50, %c0_51], %305 {strides = array<i32>} : memref<8x128xf32, #tpu.memory_space<vmem>>, vector<8x128xf32>,
    return
  }
  func.func @transform_0(%arg0: i32) -> (i32, i32, i32) {
    %c0_i32 = arith.constant 0 : i32
    %c0_i32_0 = arith.constant 0 : i32
    %c0_i32_1 = arith.constant 0 : i32
    return %arg0, %c0_i32, %c0_i32_0 : i32, i32, i32
  }
  func.func @transform_1(%arg0: i32) -> (i32, i32) {
    %c0_i32 = arith.constant 0 : i32
    %c0_i32_0 = arith.constant 0 : i32
    %c0_i32_1 = arith.constant 0 : i32
    return %c0_i32, %c0_i32_0 : i32, i32
  }
  func.func @transform_2(%arg0: i32) -> (i32, i32) {
    %c0_i32 = arith.constant 0 : i32
    %c0_i32_0 = arith.constant 0 : i32
    %c0_i32_1 = arith.constant 0 : i32
    return %c0_i32, %c0_i32_0 : i32, i32
  }
  func.func @transform_3(%arg0: i32) -> (i32, i32) {
    %c0_i32 = arith.constant 0 : i32
    %c0_i32_0 = arith.constant 0 : i32
    %c0_i32_1 = arith.constant 0 : i32
    return %c0_i32, %c0_i32_0 : i32, i32
  }
  func.func @transform_4(%arg0: i32) -> (i32, i32) {
    %c0_i32 = arith.constant 0 : i32
    %c0_i32_0 = arith.constant 0 : i32
    %c0_i32_1 = arith.constant 0 : i32
    return %c0_i32, %c0_i32_0 : i32, i32
  }
  func.func @transform_5(%arg0: i32) -> (i32, i32) {
    %c0_i32 = arith.constant 0 : i32
    %c0_i32_0 = arith.constant 0 : i32
    %c0_i32_1 = arith.constant 0 : i32
    return %c0_i32, %c0_i32_0 : i32, i32
  }
  func.func @transform_6(%arg0: i32) -> (i32, i32) {
    %c0_i32 = arith.constant 0 : i32
    %c0_i32_0 = arith.constant 0 : i32
    %c0_i32_1 = arith.constant 0 : i32
    return %c0_i32, %c0_i32_0 : i32, i32
  }
  func.func @transform_7(%arg0: i32) -> (i32, i32) {
    %c0_i32 = arith.constant 0 : i32
    %c0_i32_0 = arith.constant 0 : i32
    %c0_i32_1 = arith.constant 0 : i32
    return %c0_i32, %c0_i32_0 : i32, i32
  }
  func.func @transform_8(%arg0: i32) -> (i32, i32) {
    %c0_i32 = arith.constant 0 : i32
    %c0_i32_0 = arith.constant 0 : i32
    return %arg0, %c0_i32 : i32, i32
  }
}

</mosaic_0001>

<bundles_post_ra>
// kernel: multitask_lstm_forward.1
= control target key start
LH: loop header
LB: loop body
LE: loop exit
PB: predicated region body
PF: predicated region fallthrough
CT: control target
= control target key end

     0   :  { %v2492_v0 = vmov 0.0   ;;  %vm2493_vm0 = vmmov 0   ;;  %vm46_vm1 = vcmask 130048   ;;  %s2494_s22 = smov 64   ;;  %s2495_s23 = smov 32   ;;  %vm195_vm2 = vcmask 261120   ;;  %s3103_s1 = inlined_call_operand.vmem [shape: f32[16,128], index: 1, kind: input, shape index: {}]   ;;  %s3104_s3 = inlined_call_operand.vmem [shape: f32[32,128], index: 3, kind: input, shape index: {}]   ;;  %s3105_s0 = inlined_call_operand.vmem [shape: f32[1,64,16], index: 0, kind: input, shape index: {}]   ;;  %s3106_s2 = inlined_call_operand.vmem [shape: f32[1,128], index: 2, kind: input, shape index: {}]   ;;  %s3107_s4 = inlined_call_operand.vmem [shape: f32[64,128], index: 4, kind: input, shape index: {}]   ;;  %s3108_s5 = inlined_call_operand.vmem [shape: f32[1,128], index: 5, kind: input, shape index: {}]   ;;  %s3109_s6 = inlined_call_operand.vmem [shape: f32[32,128], index: 6, kind: input, shape index: {}]   ;;  %s3110_s7 = inlined_call_operand.vmem [shape: f32[1,128], index: 7, kind: input, shape index: {}]   ;;  %s3111_s8 = inlined_call_operand.vmem [shape: f32[8,128], index: 8, kind: output, shape index: {}]  }
   0x1   :  { %2095 = vmatprep.subr.mxu1 %v2492_v0  ;;  %v38_v1 = vld [vmem:[%s3103_s1 + $0x8] sm:$0xff]  ;;  %v2548_v2 = vld [vmem:[%s3104_s3 + $0x18] sm:$0xff]  ;;  %v37_v3 = vld [vmem:[%s3103_s1] sm:$0xff]  ;;  %2103 = vmatprep.mubr.msk.f32.mxu1 %vm2493_vm0, %v2492_v0  ;;  %vm299_vm3 = vcmask 523264  }
   0x2   :  { %2079 = vmatprep.subr.mxu0 %v38_v1  ;;  %2096 = vmatpush3.msra.mxu1 %v2548_v2  ;;  %v2559_v4 = vld [vmem:[%s3104_s3 + $0x10] sm:$0xff]  ;;  %v29_v5 = vld [vmem:[%s3105_s0] sm:$0xff]  ;;  %v30_v6 = vld [vmem:[%s3105_s0 + $0x8] sm:$0xff] }
   0x3   :  { %2080 = vmatpush3.msra.mxu0 %v38_v1  ;;  %2097 = vmatprep.subr.mxu1 %v2492_v0  ;;  %v2572_v7 = vld [vmem:[%s3104_s3 + $0x8] sm:$0xff]  ;;  %v2580_v8 = vld [vmem:[%s3104_s3] sm:$0xff]  ;;  %v31_v26 = vld [vmem:[%s3105_s0 + $0x10] sm:$0xff] }
   0x4   :  { %2081 = vmatprep.subr.mxu0 %v37_v3  ;;  %2098 = vmatpush3.msra.mxu1 %v2559_v4  ;;  %v2603_v10 = vld [vmem:[%s3106_s2] ss:$0 sm:$0xff]  ;;  %v32_v27 = vld [vmem:[%s3105_s0 + $0x18] sm:$0xff]  ;;  %v2626_v29 = vld [vmem:[%s3107_s4 + $0x30] sm:$0xff] }
   0x5   :  { %2082 = vmatpush3.msra.mxu0 %v37_v3  ;;  %2083 = vmatprep.mubr.msk.f32.mxu0 %vm46_vm1, %v29_v5  ;;  %v2620_v28 = vld [vmem:[%s3107_s4 + $0x38] sm:$0xff]  ;;  %v33_v30 = vld [vmem:[%s3105_s0 + $0x20] sm:$0xff]  ;;  %v2637_v31 = vld [vmem:[%s3107_s4 + $0x28] sm:$0xff] }
   0x6   :  { %2099 = vmatprep.subr.mxu1 %v2492_v0  ;;  %2084 = vmatmul.mubr.msk.f32.vlgmr.msra.gmra.mxu0 %vm46_vm1, %v30_v6  ;;  %v34_v32 = vld [vmem:[%s3105_s0 + $0x28] sm:$0xff]  ;;  %v2648_v33 = vld [vmem:[%s3107_s4 + $0x20] sm:$0xff]  ;;  %v35_v34 = vld [vmem:[%s3105_s0 + $0x30] sm:$0xff] }
   0x7   :  { %2100 = vmatpush3.msra.mxu1 %v2572_v7  ;;  %2106 = vmatprep.subr.mxu0 %v2492_v0  ;;  %v2659_v35 = vld [vmem:[%s3107_s4 + $0x18] sm:$0xff]  ;;  %v2671_v38 = vld [vmem:[%s3107_s4 + $0x10] sm:$0xff]  ;;  %v2679_v39 = vld [vmem:[%s3107_s4 + $0x8] sm:$0xff] }
   0x8   :  { %2101 = vmatprep.subr.mxu1 %v2492_v0  ;;  %2086 = vmatprep.mubr.msk.f32.mxu0 %vm46_vm1, %v31_v26  ;;  %v36_v36 = vld [vmem:[%s3105_s0 + $0x38] sm:$0xff]  ;;  %v2688_v40 = vld [vmem:[%s3107_s4] sm:$0xff] }
   0x9   :  { %2102 = vmatpush3.msra.mxu1 %v2580_v8  ;;  %2107 = vmatpush3.msra.mxu0 %v2620_v28  ;;  %v2743_v52 = vld [vmem:[%s3108_s5] ss:$0 sm:$0xff] }
   0xa   :  { %2104 = vmatmul.mubr.f32.vlgmr.msra.gmra.mxu1 %v2492_v0  ;;  %2125 = vmatprep.subr.mxu1 %v2492_v0 }
   0xb   :  { %2126 = vmatpush3.msra.mxu1 %v2548_v2  ;;  %2133 = vmatprep.mubr.msk.f32.mxu1 %vm2493_vm0, %v2492_v0 }
   0xc   :  { %2127 = vmatprep.subr.mxu1 %v2492_v0  ;;  %2108 = vmatprep.subr.mxu0 %v2492_v0 }
   0xd   :  { %2128 = vmatpush3.msra.mxu1 %v2559_v4  ;;  %2087 = vmatmul.mubr.msk.f32.gmra.mxu0 %vm46_vm1, %v32_v27 }
   0xe   :  { %2129 = vmatprep.subr.mxu1 %v2492_v0  ;;  %2109 = vmatpush3.msra.mxu0 %v2626_v29 }
   0xf   :  { %2130 = vmatpush3.msra.mxu1 %v2572_v7  ;;  %2089 = vmatprep.mubr.msk.f32.mxu0 %vm46_vm1, %v33_v30 }
  0x10   :  { %2131 = vmatprep.subr.mxu1 %v2492_v0  ;;  %2110 = vmatprep.subr.mxu0 %v2492_v0 }
  0x11   :  { %2132 = vmatpush3.msra.mxu1 %v2580_v8  ;;  %2111 = vmatpush3.msra.mxu0 %v2637_v31 }
  0x12   :  { %2136 = vmatprep.subr.mxu1 %v2492_v0  ;;  %2112 = vmatprep.subr.mxu0 %v2492_v0 }
  0x13   :  { %2090 = vmatmul.mubr.msk.f32.gmra.mxu0 %vm46_vm1, %v34_v32 }
  0x14   :  { %2113 = vmatpush3.msra.mxu0 %v2648_v33  ;;  %2092 = vmatprep.mubr.msk.f32.mxu0 %vm46_vm1, %v35_v34 }
  0x15   :  { %2114 = vmatprep.subr.mxu0 %v2492_v0 }
  0x16   :  { %2115 = vmatpush3.msra.mxu0 %v2659_v35 }
  0x17   :  { %2116 = vmatprep.subr.mxu0 %v2492_v0  ;;  %2093 = vmatmul.mubr.msk.f32.gmra.mxu0 %vm46_vm1, %v36_v36 }
  0x18   :  { %2117 = vmatpush3.msra.mxu0 %v2671_v38  ;;  %2122 = vmatprep.mubr.msk.f32.mxu0 %vm2493_vm0, %v2492_v0 }
  0x19   :  { %2118 = vmatprep.subr.mxu0 %v2492_v0 }
  0x1a   :  { %2119 = vmatpush3.msra.mxu0 %v2679_v39 }
  0x1b   :  { %2120 = vmatprep.subr.mxu0 %v2492_v0 }
  0x1c   :  { %2121 = vmatpush3.msra.mxu0 %v2688_v40 }
  0x1d   :  { %2155 = vmatprep.subr.mxu0 %v2492_v0 }
  0xc6   :  { %v2598_v9 = vpop.f32.mrf.mxu0 }
  0xc7   :  { %v143_v50 = vadd.f32 %v2598_v9, %v2603_v10 }
  0xc8   :  { %v137_v11 = vpop.f32.mrf.mxu0 }
  0xc9   :  { %v138_v12 = vadd.f32 %v2603_v10, %v137_v11 }
  0xca   :  { %v265_v13 = vpop.f32.mrf.mxu1 }
  0xcb   :  { %v269_v14 = vadd.f32 %v265_v13, %v138_v12 }
  0xcc   :  { %v2105_v15 = vpop.f32.mrf.mxu1 }
  0xcd   :  { %2350 = vtanh.f32 %v269_v14  ;;  %v1919_v17 = vmul.f32 -1.442695, %v269_v14  ;;  %v2726_v45 = vpop.f32.mrf.mxu0 }
  0xcf   :  { %2352 = vpow2.f32 %v1919_v17  ;;  %v2728_v46 = vpop.f32.mrf.mxu0 }
  0xd0   :  { %v148_v34 = vadd.f32 %v2603_v10, %v2728_v46 }
  0xd3   :  { %v2730_v47 = vpop.f32.mrf.mxu0 }
  0xd5   :  { %v2732_v48 = vpop.f32.mrf.mxu0 }
  0xd7   :  { %v2734_v49 = vpop.f32.mrf.mxu0 }
  0xd9   :  { %v2738_v51 = vpop.f32.mrf.mxu0 }
  0xda   :  { %v2351_v16 = vpop.eup %2350 }
  0xdb   :  { %279 = vrot.lane.b32.xlu0 %v2351_v16, %s2494_s22 }
  0xdc   :  { %v2353_v18 = vpop.eup %2352 }
  0xdd   :  { %v273_v19 = vadd.f32 1.0, %v2353_v18 }
  0xdf   :  { %2354 = vrcp.f32 %v273_v19 }
  0xec   :  { %v2355_v20 = vpop.eup %2354 }
  0xed   :  { %v277_v23 = vmul.f32 0.0, %v2355_v20 }
 0x14d   :  { %v280_v21 = vpop.permute.xlu0 %279 }
 0x14e   :  { %v282_v22 = vmul.f32 %v2355_v20, %v280_v21 }
 0x150   :  { %284 = vrot.lane.b32.xlu0 %v282_v22, %s2495_s23 }
 0x1c2   :  { %v285_v24 = vpop.permute.xlu0 %284 }
 0x1c3   :  { %v2608_v25 = vadd.f32 %v285_v24, %v277_v23 }
 0x1c5   :  { %2356 = vtanh.f32 %v2608_v25 }
 0x1d2   :  { %v2357_v37 = vpop.eup %2356 }
 0x1d3   :  { %290 = vrot.lane.b32.xlu1 %v2357_v37, %s2494_s22 }
 0x245   :  { %v291_v41 = vpop.permute.xlu1 %290 }
 0x246   :  { %v293_v42 = vmul.f32 %v2355_v20, %v291_v41 }
 0x248   :  { %295 = vrot.lane.b32.xlu1 %v293_v42, %s2495_s23 }
 0x2ba   :  { %v296_v43 = vpop.permute.xlu1 %295 }
 0x2bb   :  { %v298_v44 = vsel %vm195_vm2, %v296_v43, 0.0  ;;  %2134 = vmatmul.mubr.msk.f32.vlgmr.msra.gmra.mxu1 %vm195_vm2, %v296_v43 }
 0x2bc   :  { %2123 = vmatmul.mubr.msk.f32.vlgmr.msra.gmra.mxu0 %vm299_vm3, %v298_v44  ;;  %2137 = vmatpush3.msra.mxu1 %v2620_v28 }
 0x2bd   :  { %2138 = vmatprep.subr.mxu1 %v2492_v0  ;;  %2156 = vmatpush3.msra.mxu0 %v2548_v2 }
 0x2be   :  { %2139 = vmatpush3.msra.mxu1 %v2626_v29  ;;  %2157 = vmatprep.subr.mxu0 %v2492_v0 }
 0x2bf   :  { %2140 = vmatprep.subr.mxu1 %v2492_v0  ;;  %2158 = vmatpush3.msra.mxu0 %v2559_v4 }
 0x2c0   :  { %2141 = vmatpush3.msra.mxu1 %v2637_v31  ;;  %2159 = vmatprep.subr.mxu0 %v2492_v0 }
 0x2c1   :  { %2142 = vmatprep.subr.mxu1 %v2492_v0  ;;  %2160 = vmatpush3.msra.mxu0 %v2572_v7 }
 0x2c2   :  { %2143 = vmatpush3.msra.mxu1 %v2648_v33  ;;  %2161 = vmatprep.subr.mxu0 %v2492_v0 }
 0x2c3   :  { %2144 = vmatprep.subr.mxu1 %v2492_v0  ;;  %2162 = vmatpush3.msra.mxu0 %v2580_v8 }
 0x2c4   :  { %2145 = vmatpush3.msra.mxu1 %v2659_v35  ;;  %2163 = vmatprep.mubr.msk.f32.mxu0 %vm2493_vm0, %v2492_v0 }
 0x2c5   :  { %2146 = vmatprep.subr.mxu1 %v2492_v0  ;;  %2152 = vmatprep.mubr.msk.f32.mxu1 %vm2493_vm0, %v2492_v0 }
 0x2c6   :  { %2147 = vmatpush3.msra.mxu1 %v2671_v38  ;;  %2166 = vmatprep.subr.mxu0 %v2492_v0 }
 0x2c7   :  { %2148 = vmatprep.subr.mxu1 %v2492_v0 }
 0x2c8   :  { %2149 = vmatpush3.msra.mxu1 %v2679_v39 }
 0x2c9   :  { %2150 = vmatprep.subr.mxu1 %v2492_v0 }
 0x2ca   :  { %2151 = vmatpush3.msra.mxu1 %v2688_v40 }
 0x2cb   :  { %2185 = vmatprep.subr.mxu1 %v2492_v0 }
 0x37b   :  { %v465_v53 = vpop.f32.mrf.mxu1 }
 0x37c   :  { %v469_v54 = vadd.f32 %v465_v53, %v143_v50  ;;  %v369_v55 = vpop.f32.mrf.mxu0 }
 0x37d   :  { %v370_v56 = vadd.f32 %v2743_v52, %v369_v55  ;;  %v2135_v57 = vpop.f32.mrf.mxu1 }
 0x37e   :  { %2358 = vtanh.f32 %v469_v54  ;;  %v2124_v58 = vpop.f32.mrf.mxu0  ;;  %v1923_v61 = vmul.f32 -1.442695, %v469_v54 }
 0x37f   :  { %2360 = vtanh.f32 %v370_v56  ;;  %v1921_v62 = vmul.f32 -1.442695, %v370_v56 }
 0x380   :  { %2362 = vpow2.f32 %v1923_v61 }
 0x381   :  { %2364 = vpow2.f32 %v1921_v62 }
 0x38b   :  { %v2359_v59 = vpop.eup %2358 }
 0x38c   :  { %v2361_v60 = vpop.eup %2360  ;;  %479 = vrot.lane.b32.xlu1 %v2359_v59, %s2494_s22 }
 0x38d   :  { %382 = vrot.lane.b32.xlu0 %v2361_v60, %s2494_s22  ;;  %v2363_v63 = vpop.eup %2362 }
 0x38e   :  { %v2365_v1 = vpop.eup %2364  ;;  %v473_v3 = vadd.f32 1.0, %v2363_v63 }
 0x38f   :  { %v376_v5 = vadd.f32 1.0, %v2365_v1 }
 0x390   :  { %2366 = vrcp.f32 %v473_v3 }
 0x391   :  { %2368 = vrcp.f32 %v376_v5 }
 0x39d   :  { %v2367_v6 = vpop.eup %2366 }
 0x39e   :  { %v2369_v11 = vpop.eup %2368  ;;  %v477_v15 = vmul.f32 %v2367_v6, %v2608_v25 }
 0x39f   :  { %v380_v17 = vmul.f32 0.0, %v2369_v11 }
 0x3fe   :  { %v480_v9 = vpop.permute.xlu1 %479 }
 0x3ff   :  { %v482_v12 = vmul.f32 %v2367_v6, %v480_v9  ;;  %v383_v13 = vpop.permute.xlu0 %382 }
 0x400   :  { %v385_v14 = vmul.f32 %v2369_v11, %v383_v13 }
 0x401   :  { %484 = vrot.lane.b32.xlu1 %v482_v12, %s2495_s23 }
 0x402   :  { %387 = vrot.lane.b32.xlu0 %v385_v14, %s2495_s23 }
 0x473   :  { %v485_v16 = vpop.permute.xlu1 %484 }
 0x474   :  { %v2751_v18 = vadd.f32 %v485_v16, %v477_v15  ;;  %v388_v19 = vpop.permute.xlu0 %387 }
 0x475   :  { %v2753_v20 = vadd.f32 %v388_v19, %v380_v17 }
 0x476   :  { %2370 = vtanh.f32 %v2751_v18 }
 0x477   :  { %2372 = vtanh.f32 %v2753_v20 }
 0x483   :  { %v2371_v21 = vpop.eup %2370 }
 0x484   :  { %v2373_v22 = vpop.eup %2372  ;;  %490 = vrot.lane.b32.xlu1 %v2371_v21, %s2494_s22 }
 0x485   :  { %393 = vrot.lane.b32.xlu0 %v2373_v22, %s2494_s22  ;;  %v153_v22 = vadd.f32 %v2726_v45, %v2603_v10 }
 0x4f6   :  { %v491_v23 = vpop.permute.xlu1 %490 }
 0x4f7   :  { %v493_v24 = vmul.f32 %v2367_v6, %v491_v23  ;;  %v394_v25 = vpop.permute.xlu0 %393 }
 0x4f8   :  { %v396_v26 = vmul.f32 %v2369_v11, %v394_v25 }
 0x4f9   :  { %495 = vrot.lane.b32.xlu0 %v493_v24, %s2495_s23 }
 0x4fa   :  { %499 = vrot.lane.b32.xlu1 %v396_v26, %s2494_s22 }
 0x56b   :  { %v496_v27 = vpop.permute.xlu0 %495 }
 0x56c   :  { %v500_v30 = vpop.permute.xlu1 %499  ;;  %2164 = vmatmul.mubr.msk.f32.vlgmr.msra.gmra.mxu0 %vm195_vm2, %v496_v27 }
 0x56d   :  { %v502_v32 = vsel %vm195_vm2, %v496_v27, %v500_v30  ;;  %2167 = vmatpush3.msra.mxu0 %v2620_v28  ;;  %2182 = vmatprep.mubr.msk.f32.mxu0 %vm2493_vm0, %v2492_v0 }
 0x56e   :  { %2153 = vmatmul.mubr.msk.f32.vlgmr.msra.gmra.mxu1 %vm299_vm3, %v502_v32  ;;  %2168 = vmatprep.subr.mxu0 %v2492_v0 }
 0x56f   :  { %2169 = vmatpush3.msra.mxu0 %v2626_v29  ;;  %2186 = vmatpush3.msra.mxu1 %v2548_v2 }
 0x570   :  { %2170 = vmatprep.subr.mxu0 %v2492_v0  ;;  %2187 = vmatprep.subr.mxu1 %v2492_v0 }
 0x571   :  { %2171 = vmatpush3.msra.mxu0 %v2637_v31  ;;  %2188 = vmatpush3.msra.mxu1 %v2559_v4 }
 0x572   :  { %2172 = vmatprep.subr.mxu0 %v2492_v0  ;;  %2189 = vmatprep.subr.mxu1 %v2492_v0 }
 0x573   :  { %2173 = vmatpush3.msra.mxu0 %v2648_v33  ;;  %2190 = vmatpush3.msra.mxu1 %v2572_v7 }
 0x574   :  { %2174 = vmatprep.subr.mxu0 %v2492_v0  ;;  %2191 = vmatprep.subr.mxu1 %v2492_v0 }
 0x575   :  { %2175 = vmatpush3.msra.mxu0 %v2659_v35  ;;  %2192 = vmatpush3.msra.mxu1 %v2580_v8 }
 0x576   :  { %2176 = vmatprep.subr.mxu0 %v2492_v0  ;;  %2193 = vmatprep.mubr.msk.f32.mxu1 %vm2493_vm0, %v2492_v0 }
 0x577   :  { %2177 = vmatpush3.msra.mxu0 %v2671_v38  ;;  %2196 = vmatprep.subr.mxu1 %v2492_v0 }
 0x578   :  { %2178 = vmatprep.subr.mxu0 %v2492_v0 }
 0x579   :  { %2179 = vmatpush3.msra.mxu0 %v2679_v39 }
 0x57a   :  { %2180 = vmatprep.subr.mxu0 %v2492_v0 }
 0x57b   :  { %2181 = vmatpush3.msra.mxu0 %v2688_v40 }
 0x57c   :  { %2215 = vmatprep.subr.mxu0 %v2492_v0 }
 0x62c   :  { %v668_v36 = vpop.f32.mrf.mxu0 }
 0x62d   :  { %v672_v37 = vadd.f32 %v668_v36, %v148_v34 }
 0x62e   :  { %v572_v41 = vpop.f32.mrf.mxu1  ;;  %v2165_v42 = vpop.f32.mrf.mxu0 }
 0x62f   :  { %2374 = vtanh.f32 %v672_v37  ;;  %v573_v43 = vadd.f32 %v2743_v52, %v572_v41  ;;  %v1927_v54 = vmul.f32 -1.442695, %v672_v37 }
 0x630   :  { %v2154_v44 = vpop.f32.mrf.mxu1 }
 0x631   :  { %2376 = vtanh.f32 %v573_v43  ;;  %v1925_v55 = vmul.f32 -1.442695, %v573_v43 }
 0x632   :  { %2378 = vpow2.f32 %v1927_v54 }
 0x633   :  { %2380 = vpow2.f32 %v1925_v55 }
 0x63c   :  { %v2375_v50 = vpop.eup %2374 }
 0x63d   :  { %682 = vrot.lane.b32.xlu1 %v2375_v50, %s2494_s22 }
 0x63e   :  { %v2377_v53 = vpop.eup %2376 }
 0x63f   :  { %585 = vrot.lane.b32.xlu0 %v2377_v53, %s2494_s22  ;;  %v2379_v46 = vpop.eup %2378 }
 0x640   :  { %v2381_v56 = vpop.eup %2380  ;;  %v676_v57 = vadd.f32 1.0, %v2379_v46 }
 0x641   :  { %v579_v58 = vadd.f32 1.0, %v2381_v56 }
 0x642   :  { %2382 = vrcp.f32 %v676_v57 }
 0x643   :  { %2384 = vrcp.f32 %v579_v58 }
 0x64f   :  { %v2383_v59 = vpop.eup %2382 }
 0x650   :  { %v2385_v62 = vpop.eup %2384  ;;  %v680_v3 = vmul.f32 %v2383_v59, %v2751_v18 }
 0x651   :  { %v583_v9 = vmul.f32 %v2385_v62, %v2753_v20 }
 0x6af   :  { %v683_v60 = vpop.permute.xlu1 %682 }
 0x6b0   :  { %v685_v61 = vmul.f32 %v2383_v59, %v683_v60 }
 0x6b1   :  { %v586_v63 = vpop.permute.xlu0 %585 }
 0x6b2   :  { %687 = vrot.lane.b32.xlu1 %v685_v61, %s2495_s23  ;;  %v588_v1 = vmul.f32 %v2385_v62, %v586_v63 }
 0x6b4   :  { %590 = vrot.lane.b32.xlu0 %v588_v1, %s2495_s23 }
 0x724   :  { %v688_v5 = vpop.permute.xlu1 %687 }
 0x725   :  { %v2800_v6 = vadd.f32 %v688_v5, %v680_v3 }
 0x726   :  { %v591_v11 = vpop.permute.xlu0 %590 }
 0x727   :  { %2386 = vtanh.f32 %v2800_v6  ;;  %v2804_v12 = vadd.f32 %v591_v11, %v583_v9 }
 0x729   :  { %2388 = vtanh.f32 %v2804_v12 }
 0x734   :  { %v2387_v13 = vpop.eup %2386 }
 0x735   :  { %693 = vrot.lane.b32.xlu1 %v2387_v13, %s2494_s22  ;;  %v158_v13 = vadd.f32 %v2603_v10, %v2732_v48 }
 0x736   :  { %v2389_v14 = vpop.eup %2388 }
 0x737   :  { %596 = vrot.lane.b32.xlu0 %v2389_v14, %s2494_s22 }
 0x7a7   :  { %v694_v15 = vpop.permute.xlu1 %693 }
 0x7a8   :  { %v696_v16 = vmul.f32 %v2383_v59, %v694_v15 }
 0x7a9   :  { %v597_v17 = vpop.permute.xlu0 %596 }
 0x7aa   :  { %698 = vrot.lane.b32.xlu0 %v696_v16, %s2495_s23  ;;  %v599_v18 = vmul.f32 %v2385_v62, %v597_v17 }
 0x7ac   :  { %702 = vrot.lane.b32.xlu1 %v599_v18, %s2494_s22 }
 0x81c   :  { %v699_v19 = vpop.permute.xlu0 %698 }
 0x81d   :  { %2194 = vmatmul.mubr.msk.f32.vlgmr.msra.gmra.mxu1 %vm195_vm2, %v699_v19 }
 0x81e   :  { %2197 = vmatpush3.msra.mxu1 %v2620_v28  ;;  %2212 = vmatprep.mubr.msk.f32.mxu1 %vm2493_vm0, %v2492_v0  ;;  %v703_v20 = vpop.permute.xlu1 %702 }
 0x81f   :  { %2198 = vmatprep.subr.mxu1 %v2492_v0  ;;  %v705_v21 = vsel %vm195_vm2, %v699_v19, %v703_v20 }
 0x820   :  { %2199 = vmatpush3.msra.mxu1 %v2626_v29  ;;  %2183 = vmatmul.mubr.msk.f32.vlgmr.msra.gmra.mxu0 %vm299_vm3, %v705_v21 }
 0x821   :  { %2200 = vmatprep.subr.mxu1 %v2492_v0  ;;  %2216 = vmatpush3.msra.mxu0 %v2548_v2 }
 0x822   :  { %2201 = vmatpush3.msra.mxu1 %v2637_v31  ;;  %2217 = vmatprep.subr.mxu0 %v2492_v0 }
 0x823   :  { %2202 = vmatprep.subr.mxu1 %v2492_v0  ;;  %2218 = vmatpush3.msra.mxu0 %v2559_v4 }
 0x824   :  { %2203 = vmatpush3.msra.mxu1 %v2648_v33  ;;  %2219 = vmatprep.subr.mxu0 %v2492_v0 }
 0x825   :  { %2204 = vmatprep.subr.mxu1 %v2492_v0  ;;  %2220 = vmatpush3.msra.mxu0 %v2572_v7 }
 0x826   :  { %2205 = vmatpush3.msra.mxu1 %v2659_v35  ;;  %2221 = vmatprep.subr.mxu0 %v2492_v0 }
 0x827   :  { %2206 = vmatprep.subr.mxu1 %v2492_v0  ;;  %2222 = vmatpush3.msra.mxu0 %v2580_v8 }
 0x828   :  { %2207 = vmatpush3.msra.mxu1 %v2671_v38  ;;  %2223 = vmatprep.mubr.msk.f32.mxu0 %vm2493_vm0, %v2492_v0 }
 0x829   :  { %2208 = vmatprep.subr.mxu1 %v2492_v0  ;;  %2226 = vmatprep.subr.mxu0 %v2492_v0 }
 0x82a   :  { %2209 = vmatpush3.msra.mxu1 %v2679_v39 }
 0x82b   :  { %2210 = vmatprep.subr.mxu1 %v2492_v0 }
 0x82c   :  { %2211 = vmatpush3.msra.mxu1 %v2688_v40 }
 0x82d   :  { %2245 = vmatprep.subr.mxu1 %v2492_v0 }
 0x8dd   :  { %v871_v23 = vpop.f32.mrf.mxu1 }
 0x8de   :  { %v875_v24 = vadd.f32 %v871_v23, %v153_v22 }
 0x8df   :  { %v2195_v25 = vpop.f32.mrf.mxu1 }
 0x8e0   :  { %2390 = vtanh.f32 %v875_v24  ;;  %v775_v26 = vpop.f32.mrf.mxu0  ;;  %v1931_v36 = vmul.f32 -1.442695, %v875_v24 }
 0x8e1   :  { %v776_v27 = vadd.f32 %v2743_v52, %v775_v26 }
 0x8e2   :  { %v2184_v30 = vpop.f32.mrf.mxu0 }
 0x8e3   :  { %2392 = vtanh.f32 %v776_v27  ;;  %v1929_v37 = vmul.f32 -1.442695, %v776_v27 }
 0x8e4   :  { %2394 = vpow2.f32 %v1931_v36 }
 0x8e5   :  { %2396 = vpow2.f32 %v1929_v37 }
 0x8ed   :  { %v2391_v32 = vpop.eup %2390 }
 0x8ee   :  { %885 = vrot.lane.b32.xlu1 %v2391_v32, %s2494_s22 }
 0x8f0   :  { %v2393_v34 = vpop.eup %2392 }
 0x8f1   :  { %788 = vrot.lane.b32.xlu0 %v2393_v34, %s2494_s22  ;;  %v2395_v45 = vpop.eup %2394 }
 0x8f2   :  { %v879_v41 = vadd.f32 1.0, %v2395_v45  ;;  %v2397_v42 = vpop.eup %2396 }
 0x8f3   :  { %v782_v43 = vadd.f32 1.0, %v2397_v42 }
 0x8f4   :  { %2398 = vrcp.f32 %v879_v41 }
 0x8f5   :  { %2400 = vrcp.f32 %v782_v43 }
 0x901   :  { %v2399_v44 = vpop.eup %2398 }
 0x902   :  { %v2401_v54 = vpop.eup %2400  ;;  %v883_v56 = vmul.f32 %v2399_v44, %v2800_v6 }
 0x903   :  { %v786_v59 = vmul.f32 %v2401_v54, %v2804_v12 }
 0x960   :  { %v886_v50 = vpop.permute.xlu1 %885 }
 0x961   :  { %v888_v53 = vmul.f32 %v2399_v44, %v886_v50 }
 0x963   :  { %890 = vrot.lane.b32.xlu1 %v888_v53, %s2495_s23  ;;  %v789_v55 = vpop.permute.xlu0 %788 }
 0x964   :  { %v791_v46 = vmul.f32 %v2401_v54, %v789_v55 }
 0x966   :  { %793 = vrot.lane.b32.xlu0 %v791_v46, %s2495_s23 }
 0x9d5   :  { %v891_v57 = vpop.permute.xlu1 %890 }
 0x9d6   :  { %v2850_v58 = vadd.f32 %v891_v57, %v883_v56 }
 0x9d8   :  { %2402 = vtanh.f32 %v2850_v58  ;;  %v794_v60 = vpop.permute.xlu0 %793 }
 0x9d9   :  { %v2854_v61 = vadd.f32 %v794_v60, %v786_v59 }
 0x9db   :  { %2404 = vtanh.f32 %v2854_v61 }
 0x9e5   :  { %v2403_v62 = vpop.eup %2402 }
 0x9e6   :  { %896 = vrot.lane.b32.xlu1 %v2403_v62, %s2494_s22 }
 0x9e8   :  { %v2405_v63 = vpop.eup %2404 }
 0x9e9   :  { %799 = vrot.lane.b32.xlu0 %v2405_v63, %s2494_s22 }
 0xa58   :  { %v897_v1 = vpop.permute.xlu1 %896 }
 0xa59   :  { %v899_v3 = vmul.f32 %v2399_v44, %v897_v1 }
 0xa5b   :  { %901 = vrot.lane.b32.xlu0 %v899_v3, %s2495_s23  ;;  %v800_v5 = vpop.permute.xlu0 %799 }
 0xa5c   :  { %v802_v6 = vmul.f32 %v2401_v54, %v800_v5 }
 0xa5e   :  { %905 = vrot.lane.b32.xlu1 %v802_v6, %s2494_s22 }
 0xacd   :  { %v902_v9 = vpop.permute.xlu0 %901 }
 0xace   :  { %2224 = vmatmul.mubr.msk.f32.vlgmr.msra.gmra.mxu0 %vm195_vm2, %v902_v9 }
 0xacf   :  { %2227 = vmatpush3.msra.mxu0 %v2620_v28  ;;  %2242 = vmatprep.mubr.msk.f32.mxu0 %vm2493_vm0, %v2492_v0 }
 0xad0   :  { %2228 = vmatprep.subr.mxu0 %v2492_v0  ;;  %v906_v11 = vpop.permute.xlu1 %905 }
 0xad1   :  { %2229 = vmatpush3.msra.mxu0 %v2626_v29  ;;  %v908_v12 = vsel %vm195_vm2, %v902_v9, %v906_v11 }
 0xad2   :  { %2230 = vmatprep.subr.mxu0 %v2492_v0  ;;  %2213 = vmatmul.mubr.msk.f32.vlgmr.msra.gmra.mxu1 %vm299_vm3, %v908_v12 }
 0xad3   :  { %2231 = vmatpush3.msra.mxu0 %v2637_v31  ;;  %2246 = vmatpush3.msra.mxu1 %v2548_v2 }
 0xad4   :  { %2232 = vmatprep.subr.mxu0 %v2492_v0  ;;  %2247 = vmatprep.subr.mxu1 %v2492_v0 }
 0xad5   :  { %2233 = vmatpush3.msra.mxu0 %v2648_v33  ;;  %2248 = vmatpush3.msra.mxu1 %v2559_v4 }
 0xad6   :  { %2234 = vmatprep.subr.mxu0 %v2492_v0  ;;  %2249 = vmatprep.subr.mxu1 %v2492_v0 }
 0xad7   :  { %2235 = vmatpush3.msra.mxu0 %v2659_v35  ;;  %2250 = vmatpush3.msra.mxu1 %v2572_v7 }
 0xad8   :  { %2236 = vmatprep.subr.mxu0 %v2492_v0  ;;  %2251 = vmatprep.subr.mxu1 %v2492_v0 }
 0xad9   :  { %2253 = vmatprep.mubr.msk.f32.mxu1 %vm2493_vm0, %v2492_v0  ;;  %2252 = vmatpush3.msra.mxu1 %v2580_v8 }
 0xada   :  { %2237 = vmatpush3.msra.mxu0 %v2671_v38  ;;  %2256 = vmatprep.subr.mxu1 %v2492_v0 }
 0xadb   :  { %2238 = vmatprep.subr.mxu0 %v2492_v0 }
 0xadc   :  { %2239 = vmatpush3.msra.mxu0 %v2679_v39 }
 0xadd   :  { %2240 = vmatprep.subr.mxu0 %v2492_v0 }
 0xade   :  { %2241 = vmatpush3.msra.mxu0 %v2688_v40 }
 0xadf   :  { %2275 = vmatprep.subr.mxu0 %v2492_v0 }
 0xb8e   :  { %v1074_v14 = vpop.f32.mrf.mxu0 }
 0xb8f   :  { %v1078_v15 = vadd.f32 %v1074_v14, %v158_v13 }
 0xb90   :  { %v2225_v16 = vpop.f32.mrf.mxu0 }
 0xb91   :  { %2406 = vtanh.f32 %v1078_v15  ;;  %v1935_v22 = vmul.f32 -1.442695, %v1078_v15 }
 0xb92   :  { %v978_v17 = vpop.f32.mrf.mxu1 }
 0xb93   :  { %v979_v18 = vadd.f32 %v2743_v52, %v978_v17 }
 0xb94   :  { %v2214_v19 = vpop.f32.mrf.mxu1 }
 0xb95   :  { %2408 = vtanh.f32 %v979_v18  ;;  %v1933_v23 = vmul.f32 -1.442695, %v979_v18 }
 0xb96   :  { %2410 = vpow2.f32 %v1935_v22 }
 0xb97   :  { %2412 = vpow2.f32 %v1933_v23 }
 0xb9e   :  { %v2407_v20 = vpop.eup %2406 }
 0xb9f   :  { %1088 = vrot.lane.b32.xlu1 %v2407_v20, %s2494_s22 }
 0xba2   :  { %v2409_v21 = vpop.eup %2408 }
 0xba3   :  { %991 = vrot.lane.b32.xlu0 %v2409_v21, %s2494_s22  ;;  %v2411_v48 = vpop.eup %2410 }
 0xba4   :  { %v1082_v24 = vadd.f32 1.0, %v2411_v48  ;;  %v2413_v25 = vpop.eup %2412 }
 0xba5   :  { %v985_v26 = vadd.f32 1.0, %v2413_v25 }
 0xba6   :  { %2414 = vrcp.f32 %v1082_v24 }
 0xba7   :  { %2416 = vrcp.f32 %v985_v26 }
 0xbb3   :  { %v2415_v27 = vpop.eup %2414 }
 0xbb4   :  { %v2417_v34 = vpop.eup %2416  ;;  %v1086_v45 = vmul.f32 %v2415_v27, %v2850_v58 }
 0xbb5   :  { %v989_v43 = vmul.f32 %v2417_v34, %v2854_v61 }
 0xc11   :  { %v1089_v30 = vpop.permute.xlu1 %1088 }
 0xc12   :  { %v1091_v32 = vmul.f32 %v2415_v27, %v1089_v30 }
 0xc14   :  { %1093 = vrot.lane.b32.xlu1 %v1091_v32, %s2495_s23 }
 0xc15   :  { %v992_v36 = vpop.permute.xlu0 %991 }
 0xc16   :  { %v994_v37 = vmul.f32 %v2417_v34, %v992_v36 }
 0xc18   :  { %996 = vrot.lane.b32.xlu0 %v994_v37, %s2495_s23 }
 0xc86   :  { %v1094_v41 = vpop.permute.xlu1 %1093 }
 0xc87   :  { %v2900_v42 = vadd.f32 %v1094_v41, %v1086_v45 }
 0xc89   :  { %2418 = vtanh.f32 %v2900_v42 }
 0xc8a   :  { %v997_v44 = vpop.permute.xlu0 %996 }
 0xc8b   :  { %v2904_v50 = vadd.f32 %v997_v44, %v989_v43 }
 0xc8d   :  { %2420 = vtanh.f32 %v2904_v50 }
 0xc96   :  { %v2419_v53 = vpop.eup %2418 }
 0xc97   :  { %1099 = vrot.lane.b32.xlu1 %v2419_v53, %s2494_s22 }
 0xc9a   :  { %v2421_v54 = vpop.eup %2420 }
 0xc9b   :  { %1002 = vrot.lane.b32.xlu0 %v2421_v54, %s2494_s22 }
 0xd09   :  { %v1100_v55 = vpop.permute.xlu1 %1099 }
 0xd0a   :  { %v1102_v46 = vmul.f32 %v2415_v27, %v1100_v55 }
 0xd0c   :  { %1104 = vrot.lane.b32.xlu0 %v1102_v46, %s2495_s23 }
 0xd0d   :  { %v1003_v56 = vpop.permute.xlu0 %1002 }
 0xd0e   :  { %v1005_v57 = vmul.f32 %v2417_v34, %v1003_v56 }
 0xd10   :  { %1108 = vrot.lane.b32.xlu1 %v1005_v57, %s2494_s22 }
 0xd7e   :  { %v1105_v58 = vpop.permute.xlu0 %1104 }
 0xd7f   :  { %2254 = vmatmul.mubr.msk.f32.vlgmr.msra.gmra.mxu1 %vm195_vm2, %v1105_v58 }
 0xd80   :  { %2257 = vmatpush3.msra.mxu1 %v2620_v28  ;;  %2272 = vmatprep.mubr.msk.f32.mxu1 %vm2493_vm0, %v2492_v0 }
 0xd81   :  { %2258 = vmatprep.subr.mxu1 %v2492_v0 }
 0xd82   :  { %2259 = vmatpush3.msra.mxu1 %v2626_v29  ;;  %v1109_v59 = vpop.permute.xlu1 %1108 }
 0xd83   :  { %2260 = vmatprep.subr.mxu1 %v2492_v0  ;;  %v1111_v60 = vsel %vm195_vm2, %v1105_v58, %v1109_v59 }
 0xd84   :  { %2261 = vmatpush3.msra.mxu1 %v2637_v31  ;;  %2243 = vmatmul.mubr.msk.f32.vlgmr.msra.gmra.mxu0 %vm299_vm3, %v1111_v60 }
 0xd85   :  { %2262 = vmatprep.subr.mxu1 %v2492_v0  ;;  %2276 = vmatpush3.msra.mxu0 %v2548_v2  ;;  %v163_v2 = vadd.f32 %v2730_v47, %v2603_v10 }
 0xd86   :  { %2263 = vmatpush3.msra.mxu1 %v2648_v33  ;;  %2277 = vmatprep.subr.mxu0 %v2492_v0 }
 0xd87   :  { %2264 = vmatprep.subr.mxu1 %v2492_v0  ;;  %2278 = vmatpush3.msra.mxu0 %v2559_v4 }
 0xd88   :  { %2265 = vmatpush3.msra.mxu1 %v2659_v35  ;;  %2279 = vmatprep.subr.mxu0 %v2492_v0 }
 0xd89   :  { %2283 = vmatprep.mubr.msk.f32.mxu0 %vm2493_vm0, %v2492_v0  ;;  %2280 = vmatpush3.msra.mxu0 %v2572_v7 }
 0xd8a   :  { %2266 = vmatprep.subr.mxu1 %v2492_v0  ;;  %2281 = vmatprep.subr.mxu0 %v2492_v0 }
 0xd8b   :  { %2267 = vmatpush3.msra.mxu1 %v2671_v38  ;;  %2282 = vmatpush3.msra.mxu0 %v2580_v8 }
 0xd8c   :  { %2268 = vmatprep.subr.mxu1 %v2492_v0  ;;  %2286 = vmatprep.subr.mxu0 %v2492_v0 }
 0xd8d   :  { %2269 = vmatpush3.msra.mxu1 %v2679_v39 }
 0xd8e   :  { %2270 = vmatprep.subr.mxu1 %v2492_v0 }
 0xd8f   :  { %2271 = vmatpush3.msra.mxu1 %v2688_v40 }
 0xd90   :  { %2305 = vmatprep.subr.mxu1 %v2492_v0 }
 0xe3f   :  { %v1277_v4 = vpop.f32.mrf.mxu1 }
 0xe40   :  { %v1281_v7 = vadd.f32 %v1277_v4, %v163_v2 }
 0xe41   :  { %v2255_v61 = vpop.f32.mrf.mxu1 }
 0xe42   :  { %2422 = vtanh.f32 %v1281_v7  ;;  %v1939_v5 = vmul.f32 -1.442695, %v1281_v7 }
 0xe44   :  { %v1181_v8 = vpop.f32.mrf.mxu0 }
 0xe45   :  { %v1182_v62 = vadd.f32 %v2743_v52, %v1181_v8 }
 0xe46   :  { %v2244_v63 = vpop.f32.mrf.mxu0 }
 0xe47   :  { %2424 = vtanh.f32 %v1182_v62  ;;  %v1937_v6 = vmul.f32 -1.442695, %v1182_v62 }
 0xe48   :  { %2426 = vpow2.f32 %v1939_v5 }
 0xe49   :  { %2428 = vpow2.f32 %v1937_v6 }
 0xe4f   :  { %v2423_v1 = vpop.eup %2422 }
 0xe50   :  { %1291 = vrot.lane.b32.xlu1 %v2423_v1, %s2494_s22 }
 0xe54   :  { %v2425_v3 = vpop.eup %2424 }
 0xe55   :  { %1194 = vrot.lane.b32.xlu0 %v2425_v3, %s2494_s22  ;;  %v2427_v47 = vpop.eup %2426 }
 0xe56   :  { %v1285_v9 = vadd.f32 1.0, %v2427_v47  ;;  %v2429_v11 = vpop.eup %2428 }
 0xe57   :  { %v1188_v12 = vadd.f32 1.0, %v2429_v11  ;;  %v2482_v11 = vld [vmem:[%s3107_s4 + $0x38] sm:$0xff] }
 0xe58   :  { %2430 = vrcp.f32 %v1285_v9 }
 0xe59   :  { %2432 = vrcp.f32 %v1188_v12  ;;  %v2483_v12 = vld [vmem:[%s3107_s4 + $0x30] sm:$0xff] }
 0xe65   :  { %v2431_v13 = vpop.eup %2430 }
 0xe66   :  { %v2433_v16 = vpop.eup %2432  ;;  %v1289_v19 = vmul.f32 %v2431_v13, %v2900_v42 }
 0xe67   :  { %v1192_v22 = vmul.f32 %v2433_v16, %v2904_v50 }
 0xec2   :  { %v1292_v14 = vpop.permute.xlu1 %1291 }
 0xec3   :  { %v1294_v15 = vmul.f32 %v2431_v13, %v1292_v14 }
 0xec5   :  { %1296 = vrot.lane.b32.xlu1 %v1294_v15, %s2495_s23 }
 0xec7   :  { %v1195_v17 = vpop.permute.xlu0 %1194 }
 0xec8   :  { %v1197_v18 = vmul.f32 %v2433_v16, %v1195_v17  ;;  %v2486_v17 = vld [vmem:[%s3107_s4 + $0x18] sm:$0xff] }
 0xeca   :  { %1199 = vrot.lane.b32.xlu0 %v1197_v18, %s2495_s23  ;;  %v2487_v18 = vld [vmem:[%s3107_s4 + $0x10] sm:$0xff] }
 0xf37   :  { %v1297_v20 = vpop.permute.xlu1 %1296 }
 0xf38   :  { %v2950_v21 = vadd.f32 %v1297_v20, %v1289_v19  ;;  %v2488_v19 = vld [vmem:[%s3107_s4 + $0x8] sm:$0xff]  ;;  %v2489_v20 = vld [vmem:[%s3107_s4] sm:$0xff] }
 0xf3a   :  { %2434 = vtanh.f32 %v2950_v21 }
 0xf3c   :  { %v1200_v23 = vpop.permute.xlu0 %1199 }
 0xf3d   :  { %v2954_v48 = vadd.f32 %v1200_v23, %v1192_v22 }
 0xf3f   :  { %2436 = vtanh.f32 %v2954_v48 }
 0xf47   :  { %v2435_v24 = vpop.eup %2434 }
 0xf48   :  { %1302 = vrot.lane.b32.xlu1 %v2435_v24, %s2494_s22 }
 0xf4c   :  { %v2437_v25 = vpop.eup %2436 }
 0xf4d   :  { %1205 = vrot.lane.b32.xlu0 %v2437_v25, %s2494_s22 }
 0xfba   :  { %v1303_v26 = vpop.permute.xlu1 %1302 }
 0xfbb   :  { %v1305_v27 = vmul.f32 %v2431_v13, %v1303_v26  ;;  %v2484_v13 = vld [vmem:[%s3107_s4 + $0x28] sm:$0xff] }
 0xfbd   :  { %1307 = vrot.lane.b32.xlu0 %v1305_v27, %s2495_s23 }
 0xfbf   :  { %v1206_v30 = vpop.permute.xlu0 %1205 }
 0xfc0   :  { %v1208_v32 = vmul.f32 %v2433_v16, %v1206_v30  ;;  %v2485_v16 = vld [vmem:[%s3107_s4 + $0x20] sm:$0xff] }
 0xfc2   :  { %1311 = vrot.lane.b32.xlu1 %v1208_v32, %s2494_s22 }
0x102f   :  { %v1308_v34 = vpop.permute.xlu0 %1307 }
0x1030   :  { %2284 = vmatmul.mubr.msk.f32.vlgmr.msra.gmra.mxu0 %vm195_vm2, %v1308_v34 }
0x1031   :  { %2287 = vmatpush3.msra.mxu0 %v2620_v28  ;;  %2302 = vmatprep.mubr.msk.f32.mxu0 %vm2493_vm0, %v2492_v0  ;;  %v2478_v28 = vld [vmem:[%s3104_s3 + $0x18] sm:$0xff] }
0x1032   :  { %2288 = vmatprep.subr.mxu0 %v2492_v0 }
0x1033   :  { %2289 = vmatpush3.msra.mxu0 %v2626_v29  ;;  %v2479_v29 = vld [vmem:[%s3104_s3 + $0x10] sm:$0xff] }
0x1034   :  { %2290 = vmatprep.subr.mxu0 %v2492_v0  ;;  %v1312_v36 = vpop.permute.xlu1 %1311 }
0x1035   :  { %2291 = vmatpush3.msra.mxu0 %v2637_v31  ;;  %v1314_v37 = vsel %vm195_vm2, %v1308_v34, %v1312_v36  ;;  %v2480_v31 = vld [vmem:[%s3104_s3 + $0x8] sm:$0xff] }
0x1036   :  { %2292 = vmatprep.subr.mxu0 %v2492_v0  ;;  %2273 = vmatmul.mubr.msk.f32.vlgmr.msra.gmra.mxu1 %vm299_vm3, %v1314_v37 }
0x1037   :  { %2293 = vmatpush3.msra.mxu0 %v2648_v33  ;;  %2306 = vmatpush3.msra.mxu1 %v2478_v28  ;;  %v2481_v33 = vld [vmem:[%s3104_s3] sm:$0xff] }
0x1038   :  { %2294 = vmatprep.subr.mxu0 %v2492_v0  ;;  %2307 = vmatprep.subr.mxu1 %v2492_v0 }
0x1039   :  { %2313 = vmatprep.mubr.msk.f32.mxu1 %vm2493_vm0, %v2492_v0  ;;  %2308 = vmatpush3.msra.mxu1 %v2479_v29 }
0x103a   :  { %2295 = vmatpush3.msra.mxu0 %v2659_v35  ;;  %2309 = vmatprep.subr.mxu1 %v2492_v0  ;;  %v168_v35 = vadd.f32 %v2603_v10, %v2738_v51 }
0x103b   :  { %2296 = vmatprep.subr.mxu0 %v2492_v0  ;;  %2310 = vmatpush3.msra.mxu1 %v2480_v31 }
0x103c   :  { %2297 = vmatpush3.msra.mxu0 %v2671_v38  ;;  %2311 = vmatprep.subr.mxu1 %v2492_v0 }
0x103d   :  { %2298 = vmatprep.subr.mxu0 %v2492_v0  ;;  %2312 = vmatpush3.msra.mxu1 %v2481_v33 }
0x103e   :  { %2299 = vmatpush3.msra.mxu0 %v2679_v39  ;;  %2316 = vmatprep.subr.mxu1 %v2492_v0 }
0x103f   :  { %2300 = vmatprep.subr.mxu0 %v2492_v0 }
0x1040   :  { %2301 = vmatpush3.msra.mxu0 %v2688_v40 }
0x1041   :  { %2335 = vmatprep.subr.mxu0 %v2492_v0 }
0x10f0   :  { %v1480_v38 = vpop.f32.mrf.mxu0 }
0x10f1   :  { %v1484_v45 = vadd.f32 %v1480_v38, %v168_v35 }
0x10f2   :  { %v2285_v41 = vpop.f32.mrf.mxu0 }
0x10f3   :  { %2438 = vtanh.f32 %v1484_v45  ;;  %v1943_v40 = vmul.f32 -1.442695, %v1484_v45 }
0x10f6   :  { %v1384_v42 = vpop.f32.mrf.mxu1 }
0x10f7   :  { %v1385_v43 = vadd.f32 %v2743_v52, %v1384_v42 }
0x10f8   :  { %v2274_v44 = vpop.f32.mrf.mxu1 }
0x10f9   :  { %2440 = vtanh.f32 %v1385_v43  ;;  %v1941_v53 = vmul.f32 -1.442695, %v1385_v43 }
0x10fa   :  { %2442 = vpow2.f32 %v1943_v40 }
0x10fb   :  { %2444 = vpow2.f32 %v1941_v53 }
0x1100   :  { %v2439_v39 = vpop.eup %2438 }
0x1101   :  { %1494 = vrot.lane.b32.xlu1 %v2439_v39, %s2494_s22 }
0x1106   :  { %v2441_v50 = vpop.eup %2440 }
0x1107   :  { %1397 = vrot.lane.b32.xlu0 %v2441_v50, %s2494_s22  ;;  %v2443_v10 = vpop.eup %2442 }
0x1108   :  { %v1488_v51 = vadd.f32 1.0, %v2443_v10  ;;  %v2445_v54 = vpop.eup %2444 }
0x1109   :  { %v1391_v55 = vadd.f32 1.0, %v2445_v54 }
0x110a   :  { %2446 = vrcp.f32 %v1488_v51 }
0x110b   :  { %2448 = vrcp.f32 %v1391_v55 }
0x1117   :  { %v2447_v46 = vpop.eup %2446 }
0x1118   :  { %v2449_v58 = vpop.eup %2448  ;;  %v1492_v2 = vmul.f32 %v2447_v46, %v2950_v21  ;;  %v2490_v21 = vld [vmem:[%s3106_s2] ss:$0 sm:$0xff] }
0x1119   :  { %v1395_v61 = vmul.f32 %v2449_v58, %v2954_v48  ;;  %v173_v22 = vadd.f32 %v2490_v21, %v2734_v49 }
0x1173   :  { %v1495_v56 = vpop.permute.xlu1 %1494 }
0x1174   :  { %v1497_v57 = vmul.f32 %v2447_v46, %v1495_v56 }
0x1176   :  { %1499 = vrot.lane.b32.xlu1 %v1497_v57, %s2495_s23 }
0x1179   :  { %v1398_v59 = vpop.permute.xlu0 %1397 }
0x117a   :  { %v1400_v60 = vmul.f32 %v2449_v58, %v1398_v59  ;;  %v2491_v59 = vld [vmem:[%s3108_s5] ss:$0 sm:$0xff] }
0x117c   :  { %1402 = vrot.lane.b32.xlu0 %v1400_v60, %s2495_s23 }
0x11e8   :  { %v1500_v4 = vpop.permute.xlu1 %1499 }
0x11e9   :  { %v3008_v7 = vadd.f32 %v1500_v4, %v1492_v2 }
0x11eb   :  { %2450 = vtanh.f32 %v3008_v7 }
0x11ee   :  { %v1403_v8 = vpop.permute.xlu0 %1402 }
0x11ef   :  { %v3012_v62 = vadd.f32 %v1403_v8, %v1395_v61 }
0x11f1   :  { %2452 = vtanh.f32 %v3012_v62 }
0x11f8   :  { %v2451_v63 = vpop.eup %2450 }
0x11f9   :  { %1505 = vrot.lane.b32.xlu1 %v2451_v63, %s2494_s22 }
0x11fe   :  { %v2453_v1 = vpop.eup %2452 }
0x11ff   :  { %1408 = vrot.lane.b32.xlu0 %v2453_v1, %s2494_s22 }
0x126b   :  { %v1506_v3 = vpop.permute.xlu1 %1505 }
0x126c   :  { %v1508_v5 = vmul.f32 %v2447_v46, %v1506_v3 }
0x126e   :  { %1510 = vrot.lane.b32.xlu0 %v1508_v5, %s2495_s23 }
0x1271   :  { %v1409_v6 = vpop.permute.xlu0 %1408 }
0x1272   :  { %v1411_v47 = vmul.f32 %v2449_v58, %v1409_v6 }
0x1274   :  { %1514 = vrot.lane.b32.xlu1 %v1411_v47, %s2494_s22  ;;  %v1821_v47 = vld [vmem:[%s3109_s6 + $0x18] sm:$0xff] }
0x12e0   :  { %v1511_v9 = vpop.permute.xlu0 %1510 }
0x12e1   :  { %2314 = vmatmul.mubr.msk.f32.vlgmr.msra.gmra.mxu1 %vm195_vm2, %v1511_v9 }
0x12e2   :  { %2317 = vmatpush3.msra.mxu1 %v2482_v11  ;;  %2332 = vmatprep.mubr.msk.f32.mxu1 %vm2493_vm0, %v2492_v0  ;;  %v1819_v11 = vld [vmem:[%s3109_s6 + $0x8] sm:$0xff] }
0x12e3   :  { %2318 = vmatprep.subr.mxu1 %v2492_v0 }
0x12e4   :  { %2319 = vmatpush3.msra.mxu1 %v2483_v12  ;;  %v1818_v12 = vld [vmem:[%s3109_s6] sm:$0xff] }
0x12e5   :  { %2320 = vmatprep.subr.mxu1 %v2492_v0 }
0x12e6   :  { %2321 = vmatpush3.msra.mxu1 %v2484_v13  ;;  %v1515_v14 = vpop.permute.xlu1 %1514 }
0x12e7   :  { %2322 = vmatprep.subr.mxu1 %v2492_v0  ;;  %v1517_v15 = vsel %vm195_vm2, %v1511_v9, %v1515_v14  ;;  %v1820_v9 = vld [vmem:[%s3109_s6 + $0x10] sm:$0xff] }
0x12e8   :  { %2323 = vmatpush3.msra.mxu1 %v2485_v16  ;;  %2303 = vmatmul.mubr.msk.f32.vlgmr.msra.gmra.mxu0 %vm299_vm3, %v1517_v15 }
0x12e9   :  { %2324 = vmatprep.subr.mxu1 %v2492_v0  ;;  %2343 = vmatprep.mubr.msk.f32.mxu0 %vm2493_vm0, %v2492_v0 }
0x12ea   :  { %2325 = vmatpush3.msra.mxu1 %v2486_v17  ;;  %2336 = vmatpush3.msra.mxu0 %v1821_v47  ;;  %v1950_v17 = vld [vmem:[%s3110_s7] ss:$0 sm:$0xff] }
0x12eb   :  { %2326 = vmatprep.subr.mxu1 %v2492_v0  ;;  %2337 = vmatprep.subr.mxu0 %v2492_v0 }
0x12ec   :  { %2327 = vmatpush3.msra.mxu1 %v2487_v18  ;;  %2338 = vmatpush3.msra.mxu0 %v1820_v9 }
0x12ed   :  { %2328 = vmatprep.subr.mxu1 %v2492_v0  ;;  %2339 = vmatprep.subr.mxu0 %v2492_v0 }
0x12ee   :  { %2329 = vmatpush3.msra.mxu1 %v2488_v19  ;;  %2340 = vmatpush3.msra.mxu0 %v1819_v11 }
0x12ef   :  { %2330 = vmatprep.subr.mxu1 %v2492_v0  ;;  %2341 = vmatprep.subr.mxu0 %v2492_v0 }
0x12f0   :  { %2331 = vmatpush3.msra.mxu1 %v2489_v20  ;;  %2342 = vmatpush3.msra.mxu0 %v1818_v12 }
0x13a1   :  { %v1683_v23 = vpop.f32.mrf.mxu1 }
0x13a2   :  { %v1687_v48 = vadd.f32 %v1683_v23, %v173_v22 }
0x13a3   :  { %v2315_v24 = vpop.f32.mrf.mxu1 }
0x13a4   :  { %2454 = vtanh.f32 %v1687_v48  ;;  %v1947_v34 = vmul.f32 -1.442695, %v1687_v48 }
0x13a8   :  { %v1587_v25 = vpop.f32.mrf.mxu0 }
0x13a9   :  { %v1588_v26 = vadd.f32 %v2743_v52, %v1587_v25 }
0x13aa   :  { %v2304_v27 = vpop.f32.mrf.mxu0 }
0x13ab   :  { %2456 = vtanh.f32 %v1588_v26  ;;  %v1945_v36 = vmul.f32 -1.442695, %v1588_v26 }
0x13ac   :  { %2458 = vpow2.f32 %v1947_v34 }
0x13ad   :  { %2460 = vpow2.f32 %v1945_v36 }
0x13b1   :  { %v2455_v30 = vpop.eup %2454 }
0x13b2   :  { %1697 = vrot.lane.b32.xlu1 %v2455_v30, %s2494_s22 }
0x13b8   :  { %v2457_v32 = vpop.eup %2456 }
0x13b9   :  { %1600 = vrot.lane.b32.xlu0 %v2457_v32, %s2494_s22  ;;  %v2459_v49 = vpop.eup %2458 }
0x13ba   :  { %v1691_v37 = vadd.f32 1.0, %v2459_v49  ;;  %v2461_v28 = vpop.eup %2460 }
0x13bb   :  { %v1594_v29 = vadd.f32 1.0, %v2461_v28 }
0x13bc   :  { %2462 = vrcp.f32 %v1691_v37 }
0x13bd   :  { %2464 = vrcp.f32 %v1594_v29 }
0x13c9   :  { %v2463_v31 = vpop.eup %2462 }
0x13ca   :  { %v2465_v35 = vpop.eup %2464  ;;  %v1695_v41 = vmul.f32 %v2463_v31, %v3008_v7 }
0x13cb   :  { %v1598_v44 = vmul.f32 %v2465_v35, %v3012_v62 }
0x1424   :  { %v1698_v52 = vpop.permute.xlu1 %1697 }
0x1425   :  { %v1700_v33 = vmul.f32 %v2463_v31, %v1698_v52 }
0x1427   :  { %1702 = vrot.lane.b32.xlu1 %v1700_v33, %s2495_s23 }
0x142b   :  { %v1601_v38 = vpop.permute.xlu0 %1600 }
0x142c   :  { %v1603_v45 = vmul.f32 %v2465_v35, %v1601_v38 }
0x142e   :  { %1605 = vrot.lane.b32.xlu0 %v1603_v45, %s2495_s23 }
0x1499   :  { %v1703_v42 = vpop.permute.xlu1 %1702 }
0x149a   :  { %v1705_v43 = vadd.f32 %v1703_v42, %v1695_v41 }
0x149c   :  { %2466 = vtanh.f32 %v1705_v43 }
0x14a0   :  { %v1606_v39 = vpop.permute.xlu0 %1605 }
0x14a1   :  { %v1608_v50 = vadd.f32 %v1606_v39, %v1598_v44 }
0x14a3   :  { %2468 = vtanh.f32 %v1608_v50 }
0x14a9   :  { %v2467_v40 = vpop.eup %2466 }
0x14aa   :  { %1708 = vrot.lane.b32.xlu1 %v2467_v40, %s2494_s22 }
0x14b0   :  { %v2469_v53 = vpop.eup %2468 }
0x14b1   :  { %1611 = vrot.lane.b32.xlu0 %v2469_v53, %s2494_s22 }
0x151c   :  { %v1709_v10 = vpop.permute.xlu1 %1708 }
0x151d   :  { %v1711_v51 = vmul.f32 %v2463_v31, %v1709_v10 }
0x151f   :  { %1713 = vrot.lane.b32.xlu0 %v1711_v51, %s2495_s23 }
0x1523   :  { %v1612_v54 = vpop.permute.xlu0 %1611 }
0x1524   :  { %v1614_v55 = vmul.f32 %v2465_v35, %v1612_v54 }
0x1526   :  { %1717 = vrot.lane.b32.xlu1 %v1614_v55, %s2494_s22 }
0x1591   :  { %v1714_v46 = vpop.permute.xlu0 %1713 }
0x1598   :  { %v1718_v56 = vpop.permute.xlu1 %1717 }
0x1599   :  { %v1720_v57 = vsel %vm195_vm2, %v1714_v46, %v1718_v56 }
0x159a   :  { %2333 = vmatmul.mubr.msk.f32.vlgmr.msra.gmra.mxu1 %vm299_vm3, %v1720_v57 }
0x165a   :  { %v1790_v58 = vpop.f32.mrf.mxu1 }
0x165b   :  { %v1791_v60 = vadd.f32 %v2491_v59, %v1790_v58 }
0x165c   :  { %v2334_v2 = vpop.f32.mrf.mxu1 }
0x165d   :  { %2470 = vtanh.f32 %v1791_v60  ;;  %v1949_v7 = vmul.f32 -1.442695, %v1791_v60 }
0x165f   :  { %2472 = vpow2.f32 %v1949_v7 }
0x166a   :  { %v2471_v4 = vpop.eup %2470 }
0x166b   :  { %1803 = vrot.lane.b32.xlu0 %v2471_v4, %s2494_s22 }
0x166c   :  { %v2473_v61 = vpop.eup %2472 }
0x166d   :  { %v1797_v8 = vadd.f32 1.0, %v2473_v61 }
0x166f   :  { %2474 = vrcp.f32 %v1797_v8 }
0x167c   :  { %v2475_v62 = vpop.eup %2474 }
0x167d   :  { %v1801_v3 = vmul.f32 %v2475_v62, %v1608_v50 }
0x16dd   :  { %v1804_v63 = vpop.permute.xlu0 %1803 }
0x16de   :  { %v1806_v1 = vmul.f32 %v2475_v62, %v1804_v63 }
0x16e0   :  { %1808 = vrot.lane.b32.xlu1 %v1806_v1, %s2495_s23 }
0x1752   :  { %v1809_v5 = vpop.permute.xlu1 %1808 }
0x1753   :  { %v1811_v6 = vadd.f32 %v1809_v5, %v1801_v3 }
0x1755   :  { %2476 = vtanh.f32 %v1811_v6 }
0x1762   :  { %v2477_v13 = vpop.eup %2476 }
0x1763   :  { %1814 = vrot.lane.b32.xlu0 %v2477_v13, %s2494_s22 }
0x17d5   :  { %v1815_v14 = vpop.permute.xlu0 %1814 }
0x17d6   :  { %v1817_v15 = vmul.f32 %v2475_v62, %v1815_v14 }
0x17d8   :  { %1830 = vrot.lane.b32.xlu1 %v1817_v15, %s2495_s23 }
0x184a   :  { %v1831_v16 = vpop.permute.xlu1 %1830 }
0x184b   :  { %2344 = vmatmul.mubr.msk.f32.vlgmr.msra.gmra.mxu0 %vm195_vm2, %v1831_v16 }
0x190b   :  { %v1900_v18 = vpop.f32.mrf.mxu0 }
0x190c   :  { %v1901_v19 = vadd.f32 %v1950_v17, %v1900_v18 }
0x190d   :  { %v2345_v20 = vpop.f32.mrf.mxu0 }
0x190e   :  { %1904 = vst [vmem:[%s3111_s8] sm:$0xff] %v1901_v19 }

</bundles_post_ra>
